<compile_context>
chip_gen: v7x
topology: tpu7x:2x2x1
jax: 0.10.0
libtpu: 0.0.40
codegen_flags: <defaults>
</compile_context>

<pallas_src>
import math

import numpy as np
import jax
import jax.numpy as jnp
from jax import lax
from jax.experimental import pallas as pl
from jax.experimental.pallas import tpu as pltpu


# ----------------------------------------------------------------------------
# Fused Pallas kernel (whole forward, one grid step per batch element)
# ----------------------------------------------------------------------------
def _cnn_kernel(x_ref,
                g0, w0, b0,            # conv1
                g1, b1,                # conv2  (W via manual DMA)
                g2, b2,                # conv3  (W via manual DMA)
                g3, b3,                # conv4  (W via manual DMA)
                g4, w4, b4,            # fc1 (as 2x2 / stride-2 conv)
                w5, b5,                # fc2 (output padded to 128 lanes)
                w1_hbm, w2_hbm, w3_hbm,
                out_ref,
                w1_buf, w2_buf, w3_buf, sem):
    # Kick off the big mid-layer weight DMAs so they overlap conv1/conv2.
    copies = (pltpu.make_async_copy(w1_hbm, w1_buf, sem.at[0]),
              pltpu.make_async_copy(w2_hbm, w2_buf, sem.at[1]),
              pltpu.make_async_copy(w3_hbm, w3_buf, sem.at[2]))
    for c in copies:
        c.start()

    def layer(a_bf16, g_ref, w_bf16, b_ref, k, hp_out, act=True):
        # (1) all k H-direction taps gathered with ONE MXU matmul
        rows = jnp.dot(g_ref[...], a_bf16, preferred_element_type=jnp.float32)
        # (2) lane-concatenate the k tap blocks (all (8m, 128n) aligned)
        cat = jnp.concatenate(
            [rows[i * hp_out:(i + 1) * hp_out, :] for i in range(k)], axis=1)
        # (3) one K-stacked block-Toeplitz weight matmul, f32 accumulation
        acc = jnp.dot(cat.astype(jnp.bfloat16), w_bf16,
                      preferred_element_type=jnp.float32) + b_ref[...]
        if act:
            # Swish in f32: x*sigmoid(x), sigmoid(x) = 0.5*tanh(x/2)+0.5 (EUP)
            acc = acc * (0.5 * jnp.tanh(0.5 * acc) + 0.5)
        return acc.astype(jnp.bfloat16)

    a = x_ref[0]                                        # (28, 128) bf16
    a = layer(a, g0, w0[...], b0, k=5, hp_out=16)       # conv1: 28 -> 16
    copies[0].wait()
    a = layer(a, g1, w1_buf[...], b1, k=3, hp_out=8)    # conv2: 16 -> 8
    copies[1].wait()
    a = layer(a, g2, w2_buf[...], b2, k=3, hp_out=8)    # conv3: 8 -> 4
    copies[2].wait()
    a = layer(a, g3, w3_buf[...], b3, k=3, hp_out=8)    # conv4: 4 -> 2
    a = layer(a, g4, w4[...], b4, k=2, hp_out=8)        # fc1 (flatten + linear)
    out = jnp.dot(a, w5[...], preferred_element_type=jnp.float32) + b5[...]
    out_ref[0] = out                                    # (8,128); row 0 / col 0 real


_DENSE = ("g0", "w0", "b0", "g1", "b1", "g2", "b2", "g3", "b3",
          "g4", "w4", "b4", "w5", "b5")
_HBM = ("w1", "w2", "w3")


def fused_cnn_forward(packed, x_rows):
    """x_rows: (B, 28, 128) bf16 (lane-padded rows).  Returns (B, 8, 128) f32."""
    b = x_rows.shape[0]
    dense = [packed[n] for n in _DENSE]
    hbm = [packed[n] for n in _HBM]

    def const_spec(t):
        zeros = (0,) * t.ndim
        return pl.BlockSpec(tuple(t.shape), lambda i, _z=zeros: _z)

    in_specs = ([pl.BlockSpec((1, 28, 128), lambda i: (i, 0, 0))]
                + [const_spec(t) for t in dense]
                + [pl.BlockSpec(memory_space=pl.ANY)] * len(hbm))

    return pl.pallas_call(
        _cnn_kernel,
        out_shape=jax.ShapeDtypeStruct((b, 8, 128), jnp.float32),
        grid_spec=pltpu.PrefetchScalarGridSpec(
            num_scalar_prefetch=0,
            grid=(b,),
            in_specs=in_specs,
            out_specs=pl.BlockSpec((1, 8, 128), lambda i: (i, 0, 0)),
            scratch_shapes=[
                pltpu.VMEM(tuple(packed["w1"].shape), jnp.bfloat16),
                pltpu.VMEM(tuple(packed["w2"].shape), jnp.bfloat16),
                pltpu.VMEM(tuple(packed["w3"].shape), jnp.bfloat16),
                pltpu.SemaphoreType.DMA((3,)),
            ]),
        compiler_params=pltpu.CompilerParams(
            dimension_semantics=("parallel",)),
    )(x_rows, *dense, *hbm)


# ----------------------------------------------------------------------------
# Parameters (deterministic synthetic init, PyTorch-style uniform bounds)
# ----------------------------------------------------------------------------
def init_params(key, hidden_features=32, out_dim=1):
    c1, c2, c3 = hidden_features // 2, hidden_features, hidden_features * 2
    specs = [
        ("conv1", (c1, 1, 5, 5)),
        ("conv2", (c2, c1, 3, 3)),
        ("conv3", (c3, c2, 3, 3)),
        ("conv4", (c3, c3, 3, 3)),
        ("fc1", (c3, c3 * 4)),          # (out_features, in_features)
        ("fc2", (out_dim, c3)),
    ]
    params = {}
    for name, shape in specs:
        key, kw, kb = jax.random.split(key, 3)
        fan_in = math.prod(shape[1:])
        bound = 1.0 / math.sqrt(fan_in)
        params[name + "_w"] = jax.random.uniform(
            kw, shape, jnp.float32, minval=-bound, maxval=bound)
        params[name + "_b"] = jax.random.uniform(
            kb, (shape[0],), jnp.float32, minval=-bound, maxval=bound)
    return params


# ----------------------------------------------------------------------------
# One-time packing: PyTorch layout -> bf16 kernel constants
# ----------------------------------------------------------------------------
def _make_gather(k, stride, pad, hi_real, hp_in, ho_real, hp_out):
    """0/1 row-gather, stacked over the k H-taps: (k*hp_out, hp_in)."""
    g = np.zeros((k * hp_out, hp_in), np.float32)
    for ki in range(k):
        for o in range(ho_real):
            h = stride * o + ki - pad
            if 0 <= h < hi_real:
                g[ki * hp_out + o, h] = 1.0
    return jnp.asarray(g, jnp.bfloat16)          # 0/1 exact in bf16


def _make_w(wt, k, stride, pad, wi, cin, wo, cout, lw_in, lw_out):
    """K-stacked block-Toeplitz weight: (k*lw_in, lw_out)."""
    wt = np.asarray(wt, np.float32)              # (Cout, Cin, k, k)
    w = np.zeros((k * lw_in, lw_out), np.float32)
    for ki in range(k):
        base = ki * lw_in
        for o in range(wo):
            for kj in range(k):
                c = stride * o + kj - pad
                if 0 <= c < wi:
                    w[base + c * cin: base + (c + 1) * cin,
                      o * cout:(o + 1) * cout] = wt[:, :, ki, kj].T
    return jnp.asarray(w, jnp.bfloat16)


def _make_bias(b, wo, lw_out):
    bias = np.zeros((1, lw_out), np.float32)
    b = np.asarray(b, np.float32)
    cout = b.shape[0]
    for o in range(wo):
        bias[0, o * cout:(o + 1) * cout] = b
    return jnp.asarray(bias)                     # biases stay f32


def pack_for_kernel(params, hidden_features=32, out_dim=1, out_lanes=128):
    c1, c2, c3 = hidden_features // 2, hidden_features, hidden_features * 2
    p = {}
    # conv1: 28x28x1 -> 16x16xc1  (k=5, s=2, p=4); input lanes padded to 128
    p["g0"] = _make_gather(5, 2, 4, 28, 28, 16, 16)
    p["w0"] = _make_w(params["conv1_w"], 5, 2, 4, 28, 1, 16, c1, 128, 16 * c1)
    p["b0"] = _make_bias(params["conv1_b"], 16, 16 * c1)
    # conv2: 16 -> 8
    p["g1"] = _make_gather(3, 2, 1, 16, 16, 8, 8)
    p["w1"] = _make_w(params["conv2_w"], 3, 2, 1, 16, c1, 8, c2, 16 * c1, 8 * c2)
    p["b1"] = _make_bias(params["conv2_b"], 8, 8 * c2)
    # conv3: 8 -> 4 (output rows padded to 8 sublanes)
    p["g2"] = _make_gather(3, 2, 1, 8, 8, 4, 8)
    p["w2"] = _make_w(params["conv3_w"], 3, 2, 1, 8, c2, 4, c3, 8 * c2, 4 * c3)
    p["b2"] = _make_bias(params["conv3_b"], 4, 4 * c3)
    # conv4: 4 -> 2 (input slab has 4 real rows of 8)
    p["g3"] = _make_gather(3, 2, 1, 4, 8, 2, 8)
    p["w3"] = _make_w(params["conv4_w"], 3, 2, 1, 4, c3, 2, c3, 4 * c3, 2 * c3)
    p["b3"] = _make_bias(params["conv4_b"], 2, 2 * c3)
    # fc1 == Conv2d(c3, c3, kernel=2, stride=2) on the final 2x2 map; the
    # reshape reproduces nn.Flatten's NCHW (c, h, w) order exactly.
    fc1_wt = np.asarray(params["fc1_w"], np.float32).reshape(c3, c3, 2, 2)
    p["g4"] = _make_gather(2, 2, 0, 2, 8, 1, 8)
    p["w4"] = _make_w(fc1_wt, 2, 2, 0, 2, c3, 1, c3, 2 * c3, c3)
    p["b4"] = _make_bias(params["fc1_b"], 1, c3)
    # fc2: 1x1 conv, output zero-padded to `out_lanes` (lane-dense store)
    fc2_wt = np.zeros((out_lanes, c3, 1, 1), np.float32)
    fc2_wt[:out_dim, :, 0, 0] = np.asarray(params["fc2_w"], np.float32)
    fc2_b = np.zeros((out_lanes,), np.float32)
    fc2_b[:out_dim] = np.asarray(params["fc2_b"], np.float32)
    p["w5"] = _make_w(fc2_wt, 1, 1, 0, 1, c3, 1, out_lanes, c3, out_lanes)
    p["b5"] = _make_bias(fc2_b, 1, out_lanes)
    return p


# ----------------------------------------------------------------------------
# Full CNNModel forward (NCHW input, PyTorch semantics)
# ----------------------------------------------------------------------------
def cnn_model_forward(packed, x_nchw, out_dim=1):
    b, c, h, w = x_nchw.shape
    # NCHW -> per-batch row matrix A[h, w*C + c]; pad lanes to 128.
    x_rows = jnp.transpose(x_nchw, (0, 2, 3, 1)).reshape(b, h, w * c)
    x_rows = jnp.pad(x_rows, ((0, 0), (0, 0), (0, 128 - w * c)))
    x_rows = x_rows.astype(jnp.bfloat16)
    y = fused_cnn_forward(packed, x_rows)        # (B, 8, 128)
    y = y[:, 0, :out_dim]
    return jnp.squeeze(y, axis=-1) if out_dim == 1 else y   # .squeeze(dim=-1)


# ----------------------------------------------------------------------------
# Pure-JAX reference (correctness check only)
# ----------------------------------------------------------------------------
def reference_forward(params, x):
    def conv(t, w, b, stride, pad):
        y = lax.conv_general_dilated(
            t, w, (stride, stride), ((pad, pad), (pad, pad)),
            dimension_numbers=("NCHW", "OIHW", "NCHW"))
        return y + b.reshape(1, -1, 1, 1)

    def swish(t):
        return t * jax.nn.sigmoid(t)

    x = swish(conv(x, params["conv1_w"], params["conv1_b"], 2, 4))
    x = swish(conv(x, params["conv2_w"], params["conv2_b"], 2, 1))
    x = swish(conv(x, params["conv3_w"], params["conv3_b"], 2, 1))
    x = swish(conv(x, params["conv4_w"], params["conv4_b"], 2, 1))
    x = x.reshape(x.shape[0], -1)                # nn.Flatten (NCHW order)
    x = swish(x @ params["fc1_w"].T + params["fc1_b"])
    x = x @ params["fc2_w"].T + params["fc2_b"]
    return jnp.squeeze(x, axis=-1)


if __name__ == "__main__":
    key = jax.random.PRNGKey(0)
    k_params, k_x = jax.random.split(key)

    params = init_params(k_params, hidden_features=32, out_dim=1)

    # 28x28 single-channel input is what Linear(c_hid3 * 4, ...) implies
    # (28 -> 16 -> 8 -> 4 -> 2 spatially).
    B = 2
    x = jax.random.normal(k_x, (B, 1, 28, 28), dtype=jnp.float32)

    packed = pack_for_kernel(params, hidden_features=32, out_dim=1)

    out = jax.jit(cnn_model_forward)(packed, x)
    out = jax.block_until_ready(out)
    assert out.shape == (B,), out.shape

    ref = jax.block_until_ready(jax.jit(reference_forward)(params, x))
    # bf16 weights/activations with f32 accumulation vs f32 reference.
    assert jnp.allclose(out, ref, rtol=2e-2, atol=2e-3), (out, ref)
    print("KERNEL_OK")
</pallas_src>

<mosaic_0001>
module attributes {stable_mosaic.version = 11 : i64} {
  func.func @_cnn_kernel(%arg0: i32, %arg1: memref<1x28x128xbf16, #tpu.memory_space<vmem>>, %arg2: memref<80x28xbf16, #tpu.memory_space<vmem>>, %arg3: memref<640x256xbf16, #tpu.memory_space<vmem>>, %arg4: memref<1x256xf32, #tpu.memory_space<vmem>>, %arg5: memref<24x16xbf16, #tpu.memory_space<vmem>>, %arg6: memref<1x256xf32, #tpu.memory_space<vmem>>, %arg7: memref<24x8xbf16, #tpu.memory_space<vmem>>, %arg8: memref<1x256xf32, #tpu.memory_space<vmem>>, %arg9: memref<24x8xbf16, #tpu.memory_space<vmem>>, %arg10: memref<1x128xf32, #tpu.memory_space<vmem>>, %arg11: memref<16x8xbf16, #tpu.memory_space<vmem>>, %arg12: memref<256x64xbf16, #tpu.memory_space<vmem>>, %arg13: memref<1x64xf32, #tpu.memory_space<vmem>>, %arg14: memref<64x128xbf16, #tpu.memory_space<vmem>>, %arg15: memref<1x128xf32, #tpu.memory_space<vmem>>, %arg16: memref<768x256xbf16, #tpu.memory_space<any>>, %arg17: memref<768x256xbf16, #tpu.memory_space<any>>, %arg18: memref<768x128xbf16, #tpu.memory_space<any>>, %arg19: memref<1x8x128xf32, #tpu.memory_space<vmem>>, %arg20: memref<768x256xbf16, #tpu.memory_space<vmem>>, %arg21: memref<768x256xbf16, #tpu.memory_space<vmem>>, %arg22: memref<768x128xbf16, #tpu.memory_space<vmem>>, %arg23: memref<3x!tpu.dma_semaphore, #tpu.memory_space<semaphore_mem>>) attributes {dimension_semantics = [#tpu.dimension_semantics<parallel>], iteration_bounds = array<i64: 2>, scalar_prefetch = 0 : i64, scratch_operands = 4 : i64, tpu.core_type = #tpu.core_type<tc>, window_params = [{transform_indices = @transform_0, window_bounds = array<i64: 1, 28, 128>}, {pipeline_mode = #tpu.pipeline_mode<synchronous>, transform_indices = @transform_1, window_bounds = array<i64: 80, 28>}, {pipeline_mode = #tpu.pipeline_mode<synchronous>, transform_indices = @transform_2, window_bounds = array<i64: 640, 256>}, {pipeline_mode = #tpu.pipeline_mode<synchronous>, transform_indices = @transform_3, window_bounds = array<i64: 1, 256>}, {pipeline_mode = #tpu.pipeline_mode<synchronous>, transform_indices = @transform_4, window_bounds = array<i64: 24, 16>}, {pipeline_mode = #tpu.pipeline_mode<synchronous>, transform_indices = @transform_5, window_bounds = array<i64: 1, 256>}, {pipeline_mode = #tpu.pipeline_mode<synchronous>, transform_indices = @transform_6, window_bounds = array<i64: 24, 8>}, {pipeline_mode = #tpu.pipeline_mode<synchronous>, transform_indices = @transform_7, window_bounds = array<i64: 1, 256>}, {pipeline_mode = #tpu.pipeline_mode<synchronous>, transform_indices = @transform_8, window_bounds = array<i64: 24, 8>}, {pipeline_mode = #tpu.pipeline_mode<synchronous>, transform_indices = @transform_9, window_bounds = array<i64: 1, 128>}, {pipeline_mode = #tpu.pipeline_mode<synchronous>, transform_indices = @transform_10, window_bounds = array<i64: 16, 8>}, {pipeline_mode = #tpu.pipeline_mode<synchronous>, transform_indices = @transform_11, window_bounds = array<i64: 256, 64>}, {pipeline_mode = #tpu.pipeline_mode<synchronous>, transform_indices = @transform_12, window_bounds = array<i64: 1, 64>}, {pipeline_mode = #tpu.pipeline_mode<synchronous>, transform_indices = @transform_13, window_bounds = array<i64: 64, 128>}, {pipeline_mode = #tpu.pipeline_mode<synchronous>, transform_indices = @transform_14, window_bounds = array<i64: 1, 128>}, {}, {}, {}, {transform_indices = @transform_18, window_bounds = array<i64: 1, 8, 128>}]} {
    %c0_i32 = arith.constant 0 : i32
    %0 = tpu.memref_slice %arg23[%c0_i32] : memref<3x!tpu.dma_semaphore, #tpu.memory_space<semaphore_mem>> -> memref<1x!tpu.dma_semaphore, #tpu.memory_space<semaphore_mem>>
    %1 = tpu.memref_squeeze %0 : memref<1x!tpu.dma_semaphore, #tpu.memory_space<semaphore_mem>> -> memref<!tpu.dma_semaphore, #tpu.memory_space<semaphore_mem>>
    tpu.enqueue_dma source(%arg16 : memref<768x256xbf16, #tpu.memory_space<any>>) target(%arg20 : memref<768x256xbf16, #tpu.memory_space<vmem>>) target_semaphore(%1 : memref<!tpu.dma_semaphore, #tpu.memory_space<semaphore_mem>>)
    %c1_i32 = arith.constant 1 : i32
    %2 = tpu.memref_slice %arg23[%c1_i32] : memref<3x!tpu.dma_semaphore, #tpu.memory_space<semaphore_mem>> -> memref<1x!tpu.dma_semaphore, #tpu.memory_space<semaphore_mem>>
    %3 = tpu.memref_squeeze %2 : memref<1x!tpu.dma_semaphore, #tpu.memory_space<semaphore_mem>> -> memref<!tpu.dma_semaphore, #tpu.memory_space<semaphore_mem>>
    tpu.enqueue_dma source(%arg17 : memref<768x256xbf16, #tpu.memory_space<any>>) target(%arg21 : memref<768x256xbf16, #tpu.memory_space<vmem>>) target_semaphore(%3 : memref<!tpu.dma_semaphore, #tpu.memory_space<semaphore_mem>>)
    %c2_i32 = arith.constant 2 : i32
    %4 = tpu.memref_slice %arg23[%c2_i32] : memref<3x!tpu.dma_semaphore, #tpu.memory_space<semaphore_mem>> -> memref<1x!tpu.dma_semaphore, #tpu.memory_space<semaphore_mem>>
    %5 = tpu.memref_squeeze %4 : memref<1x!tpu.dma_semaphore, #tpu.memory_space<semaphore_mem>> -> memref<!tpu.dma_semaphore, #tpu.memory_space<semaphore_mem>>
    tpu.enqueue_dma source(%arg18 : memref<768x128xbf16, #tpu.memory_space<any>>) target(%arg22 : memref<768x128xbf16, #tpu.memory_space<vmem>>) target_semaphore(%5 : memref<!tpu.dma_semaphore, #tpu.memory_space<semaphore_mem>>)
    %c0 = arith.constant 0 : index
    %c0_0 = arith.constant 0 : index
    %c0_1 = arith.constant 0 : index
    %6 = vector.load %arg1[%c0, %c0_0, %c0_1] : memref<1x28x128xbf16, #tpu.memory_space<vmem>>, vector<1x28x128xbf16>
    %7 = vector.shape_cast %6 : vector<1x28x128xbf16> to vector<28x128xbf16>
    %c0_2 = arith.constant 0 : index
    %c0_3 = arith.constant 0 : index
    %8 = vector.load %arg3[%c0_2, %c0_3] : memref<640x256xbf16, #tpu.memory_space<vmem>>, vector<640x256xbf16>
    %c0_4 = arith.constant 0 : index
    %c0_5 = arith.constant 0 : index
    %9 = vector.load %arg2[%c0_4, %c0_5] : memref<80x28xbf16, #tpu.memory_space<vmem>>, vector<80x28xbf16>
    %cst = arith.constant dense<0.000000e+00> : vector<80x128xf32>
    %10 = tpu.matmul %9, %7, %cst {dimension_numbers = #tpu.dot_dimension_numbers<[1], [0], [0], [1], [0, 0, 1, 1], [], []>} : vector<80x28xbf16>, vector<28x128xbf16>, vector<80x128xf32> -> vector<80x128xf32>
    %11 = vector.extract_strided_slice %10 {offsets = [0, 0], sizes = [16, 128], strides = [1, 1]} : vector<80x128xf32> to vector<16x128xf32>
    %12 = vector.extract_strided_slice %10 {offsets = [16, 0], sizes = [16, 128], strides = [1, 1]} : vector<80x128xf32> to vector<16x128xf32>
    %13 = vector.extract_strided_slice %10 {offsets = [32, 0], sizes = [16, 128], strides = [1, 1]} : vector<80x128xf32> to vector<16x128xf32>
    %14 = vector.extract_strided_slice %10 {offsets = [48, 0], sizes = [16, 128], strides = [1, 1]} : vector<80x128xf32> to vector<16x128xf32>
    %15 = vector.extract_strided_slice %10 {offsets = [64, 0], sizes = [16, 128], strides = [1, 1]} : vector<80x128xf32> to vector<16x128xf32>
    %16 = tpu.concatenate %11, %12, %13, %14, %15 in 1 : vector<16x128xf32>, vector<16x128xf32>, vector<16x128xf32>, vector<16x128xf32>, vector<16x128xf32> -> vector<16x640xf32>
    %17 = arith.truncf %16 : vector<16x640xf32> to vector<16x640xbf16>
    %cst_6 = arith.constant dense<0.000000e+00> : vector<16x256xf32>
    %18 = tpu.matmul %17, %8, %cst_6 {dimension_numbers = #tpu.dot_dimension_numbers<[1], [0], [0], [1], [0, 0, 1, 1], [], []>} : vector<16x640xbf16>, vector<640x256xbf16>, vector<16x256xf32> -> vector<16x256xf32>
    %c0_7 = arith.constant 0 : index
    %c0_8 = arith.constant 0 : index
    %19 = vector.load %arg4[%c0_7, %c0_8] : memref<1x256xf32, #tpu.memory_space<vmem>>, vector<1x256xf32>
    %20 = vector.broadcast %19 : vector<1x256xf32> to vector<16x256xf32>
    %21 = arith.addf %18, %20 : vector<16x256xf32>
    %cst_9 = arith.constant 5.000000e-01 : f32
    %22 = vector.broadcast %cst_9 : f32 to vector<16x256xf32>
    %23 = arith.mulf %22, %21 : vector<16x256xf32>
    %24 = math.tanh %23 : vector<16x256xf32>
    %cst_10 = arith.constant 5.000000e-01 : f32
    %25 = vector.broadcast %cst_10 : f32 to vector<16x256xf32>
    %26 = arith.mulf %25, %24 : vector<16x256xf32>
    %cst_11 = arith.constant 5.000000e-01 : f32
    %27 = vector.broadcast %cst_11 : f32 to vector<16x256xf32>
    %28 = arith.addf %26, %27 : vector<16x256xf32>
    %29 = arith.mulf %21, %28 : vector<16x256xf32>
    %30 = arith.truncf %29 : vector<16x256xf32> to vector<16x256xbf16>
    %c0_i32_12 = arith.constant 0 : i32
    %31 = tpu.memref_slice %arg23[%c0_i32_12] : memref<3x!tpu.dma_semaphore, #tpu.memory_space<semaphore_mem>> -> memref<1x!tpu.dma_semaphore, #tpu.memory_space<semaphore_mem>>
    %32 = tpu.memref_squeeze %31 : memref<1x!tpu.dma_semaphore, #tpu.memory_space<semaphore_mem>> -> memref<!tpu.dma_semaphore, #tpu.memory_space<semaphore_mem>>
    tpu.wait_dma2 semaphore(%32 : memref<!tpu.dma_semaphore, #tpu.memory_space<semaphore_mem>>) src(%arg16 : memref<768x256xbf16, #tpu.memory_space<any>>) dst(%arg20 : memref<768x256xbf16, #tpu.memory_space<vmem>>)
    %c0_13 = arith.constant 0 : index
    %c0_14 = arith.constant 0 : index
    %33 = vector.load %arg20[%c0_13, %c0_14] : memref<768x256xbf16, #tpu.memory_space<vmem>>, vector<768x256xbf16>
    %c0_15 = arith.constant 0 : index
    %c0_16 = arith.constant 0 : index
    %34 = vector.load %arg5[%c0_15, %c0_16] : memref<24x16xbf16, #tpu.memory_space<vmem>>, vector<24x16xbf16>
    %cst_17 = arith.constant dense<0.000000e+00> : vector<24x256xf32>
    %35 = tpu.matmul %34, %30, %cst_17 {dimension_numbers = #tpu.dot_dimension_numbers<[1], [0], [0], [1], [0, 0, 1, 1], [], []>} : vector<24x16xbf16>, vector<16x256xbf16>, vector<24x256xf32> -> vector<24x256xf32>
    %36 = vector.extract_strided_slice %35 {offsets = [0, 0], sizes = [8, 256], strides = [1, 1]} : vector<24x256xf32> to vector<8x256xf32>
    %37 = vector.extract_strided_slice %35 {offsets = [8, 0], sizes = [8, 256], strides = [1, 1]} : vector<24x256xf32> to vector<8x256xf32>
    %38 = vector.extract_strided_slice %35 {offsets = [16, 0], sizes = [8, 256], strides = [1, 1]} : vector<24x256xf32> to vector<8x256xf32>
    %39 = tpu.concatenate %36, %37, %38 in 1 : vector<8x256xf32>, vector<8x256xf32>, vector<8x256xf32> -> vector<8x768xf32>
    %40 = arith.truncf %39 : vector<8x768xf32> to vector<8x768xbf16>
    %cst_18 = arith.constant dense<0.000000e+00> : vector<8x256xf32>
    %41 = tpu.matmul %40, %33, %cst_18 {dimension_numbers = #tpu.dot_dimension_numbers<[1], [0], [0], [1], [0, 0, 1, 1], [], []>} : vector<8x768xbf16>, vector<768x256xbf16>, vector<8x256xf32> -> vector<8x256xf32>
    %c0_19 = arith.constant 0 : index
    %c0_20 = arith.constant 0 : index
    %42 = vector.load %arg6[%c0_19, %c0_20] : memref<1x256xf32, #tpu.memory_space<vmem>>, vector<1x256xf32>
    %43 = vector.broadcast %42 : vector<1x256xf32> to vector<8x256xf32>
    %44 = arith.addf %41, %43 : vector<8x256xf32>
    %cst_21 = arith.constant 5.000000e-01 : f32
    %45 = vector.broadcast %cst_21 : f32 to vector<8x256xf32>
    %46 = arith.mulf %45, %44 : vector<8x256xf32>
    %47 = math.tanh %46 : vector<8x256xf32>
    %cst_22 = arith.constant 5.000000e-01 : f32
    %48 = vector.broadcast %cst_22 : f32 to vector<8x256xf32>
    %49 = arith.mulf %48, %47 : vector<8x256xf32>
    %cst_23 = arith.constant 5.000000e-01 : f32
    %50 = vector.broadcast %cst_23 : f32 to vector<8x256xf32>
    %51 = arith.addf %49, %50 : vector<8x256xf32>
    %52 = arith.mulf %44, %51 : vector<8x256xf32>
    %53 = arith.truncf %52 : vector<8x256xf32> to vector<8x256xbf16>
    %c1_i32_24 = arith.constant 1 : i32
    %54 = tpu.memref_slice %arg23[%c1_i32_24] : memref<3x!tpu.dma_semaphore, #tpu.memory_space<semaphore_mem>> -> memref<1x!tpu.dma_semaphore, #tpu.memory_space<semaphore_mem>>
    %55 = tpu.memref_squeeze %54 : memref<1x!tpu.dma_semaphore, #tpu.memory_space<semaphore_mem>> -> memref<!tpu.dma_semaphore, #tpu.memory_space<semaphore_mem>>
    tpu.wait_dma2 semaphore(%55 : memref<!tpu.dma_semaphore, #tpu.memory_space<semaphore_mem>>) src(%arg17 : memref<768x256xbf16, #tpu.memory_space<any>>) dst(%arg21 : memref<768x256xbf16, #tpu.memory_space<vmem>>)
    %c0_25 = arith.constant 0 : index
    %c0_26 = arith.constant 0 : index
    %56 = vector.load %arg21[%c0_25, %c0_26] : memref<768x256xbf16, #tpu.memory_space<vmem>>, vector<768x256xbf16>
    %c0_27 = arith.constant 0 : index
    %c0_28 = arith.constant 0 : index
    %57 = vector.load %arg7[%c0_27, %c0_28] : memref<24x8xbf16, #tpu.memory_space<vmem>>, vector<24x8xbf16>
    %cst_29 = arith.constant dense<0.000000e+00> : vector<24x256xf32>
    %58 = tpu.matmul %57, %53, %cst_29 {dimension_numbers = #tpu.dot_dimension_numbers<[1], [0], [0], [1], [0, 0, 1, 1], [], []>} : vector<24x8xbf16>, vector<8x256xbf16>, vector<24x256xf32> -> vector<24x256xf32>
    %59 = vector.extract_strided_slice %58 {offsets = [0, 0], sizes = [8, 256], strides = [1, 1]} : vector<24x256xf32> to vector<8x256xf32>
    %60 = vector.extract_strided_slice %58 {offsets = [8, 0], sizes = [8, 256], strides = [1, 1]} : vector<24x256xf32> to vector<8x256xf32>
    %61 = vector.extract_strided_slice %58 {offsets = [16, 0], sizes = [8, 256], strides = [1, 1]} : vector<24x256xf32> to vector<8x256xf32>
    %62 = tpu.concatenate %59, %60, %61 in 1 : vector<8x256xf32>, vector<8x256xf32>, vector<8x256xf32> -> vector<8x768xf32>
    %63 = arith.truncf %62 : vector<8x768xf32> to vector<8x768xbf16>
    %cst_30 = arith.constant dense<0.000000e+00> : vector<8x256xf32>
    %64 = tpu.matmul %63, %56, %cst_30 {dimension_numbers = #tpu.dot_dimension_numbers<[1], [0], [0], [1], [0, 0, 1, 1], [], []>} : vector<8x768xbf16>, vector<768x256xbf16>, vector<8x256xf32> -> vector<8x256xf32>
    %c0_31 = arith.constant 0 : index
    %c0_32 = arith.constant 0 : index
    %65 = vector.load %arg8[%c0_31, %c0_32] : memref<1x256xf32, #tpu.memory_space<vmem>>, vector<1x256xf32>
    %66 = vector.broadcast %65 : vector<1x256xf32> to vector<8x256xf32>
    %67 = arith.addf %64, %66 : vector<8x256xf32>
    %cst_33 = arith.constant 5.000000e-01 : f32
    %68 = vector.broadcast %cst_33 : f32 to vector<8x256xf32>
    %69 = arith.mulf %68, %67 : vector<8x256xf32>
    %70 = math.tanh %69 : vector<8x256xf32>
    %cst_34 = arith.constant 5.000000e-01 : f32
    %71 = vector.broadcast %cst_34 : f32 to vector<8x256xf32>
    %72 = arith.mulf %71, %70 : vector<8x256xf32>
    %cst_35 = arith.constant 5.000000e-01 : f32
    %73 = vector.broadcast %cst_35 : f32 to vector<8x256xf32>
    %74 = arith.addf %72, %73 : vector<8x256xf32>
    %75 = arith.mulf %67, %74 : vector<8x256xf32>
    %76 = arith.truncf %75 : vector<8x256xf32> to vector<8x256xbf16>
    %c2_i32_36 = arith.constant 2 : i32
    %77 = tpu.memref_slice %arg23[%c2_i32_36] : memref<3x!tpu.dma_semaphore, #tpu.memory_space<semaphore_mem>> -> memref<1x!tpu.dma_semaphore, #tpu.memory_space<semaphore_mem>>
    %78 = tpu.memref_squeeze %77 : memref<1x!tpu.dma_semaphore, #tpu.memory_space<semaphore_mem>> -> memref<!tpu.dma_semaphore, #tpu.memory_space<semaphore_mem>>
    tpu.wait_dma2 semaphore(%78 : memref<!tpu.dma_semaphore, #tpu.memory_space<semaphore_mem>>) src(%arg18 : memref<768x128xbf16, #tpu.memory_space<any>>) dst(%arg22 : memref<768x128xbf16, #tpu.memory_space<vmem>>)
    %c0_37 = arith.constant 0 : index
    %c0_38 = arith.constant 0 : index
    %79 = vector.load %arg22[%c0_37, %c0_38] : memref<768x128xbf16, #tpu.memory_space<vmem>>, vector<768x128xbf16>
    %c0_39 = arith.constant 0 : index
    %c0_40 = arith.constant 0 : index
    %80 = vector.load %arg9[%c0_39, %c0_40] : memref<24x8xbf16, #tpu.memory_space<vmem>>, vector<24x8xbf16>
    %cst_41 = arith.constant dense<0.000000e+00> : vector<24x256xf32>
    %81 = tpu.matmul %80, %76, %cst_41 {dimension_numbers = #tpu.dot_dimension_numbers<[1], [0], [0], [1], [0, 0, 1, 1], [], []>} : vector<24x8xbf16>, vector<8x256xbf16>, vector<24x256xf32> -> vector<24x256xf32>
    %82 = vector.extract_strided_slice %81 {offsets = [0, 0], sizes = [8, 256], strides = [1, 1]} : vector<24x256xf32> to vector<8x256xf32>
    %83 = vector.extract_strided_slice %81 {offsets = [8, 0], sizes = [8, 256], strides = [1, 1]} : vector<24x256xf32> to vector<8x256xf32>
    %84 = vector.extract_strided_slice %81 {offsets = [16, 0], sizes = [8, 256], strides = [1, 1]} : vector<24x256xf32> to vector<8x256xf32>
    %85 = tpu.concatenate %82, %83, %84 in 1 : vector<8x256xf32>, vector<8x256xf32>, vector<8x256xf32> -> vector<8x768xf32>
    %86 = arith.truncf %85 : vector<8x768xf32> to vector<8x768xbf16>
    %cst_42 = arith.constant dense<0.000000e+00> : vector<8x128xf32>
    %87 = tpu.matmul %86, %79, %cst_42 {dimension_numbers = #tpu.dot_dimension_numbers<[1], [0], [0], [1], [0, 0, 1, 1], [], []>} : vector<8x768xbf16>, vector<768x128xbf16>, vector<8x128xf32> -> vector<8x128xf32>
    %c0_43 = arith.constant 0 : index
    %c0_44 = arith.constant 0 : index
    %88 = vector.load %arg10[%c0_43, %c0_44] : memref<1x128xf32, #tpu.memory_space<vmem>>, vector<1x128xf32>
    %89 = vector.broadcast %88 : vector<1x128xf32> to vector<8x128xf32>
    %90 = arith.addf %87, %89 : vector<8x128xf32>
    %cst_45 = arith.constant 5.000000e-01 : f32
    %91 = vector.broadcast %cst_45 : f32 to vector<8x128xf32>
    %92 = arith.mulf %91, %90 : vector<8x128xf32>
    %93 = math.tanh %92 : vector<8x128xf32>
    %cst_46 = arith.constant 5.000000e-01 : f32
    %94 = vector.broadcast %cst_46 : f32 to vector<8x128xf32>
    %95 = arith.mulf %94, %93 : vector<8x128xf32>
    %cst_47 = arith.constant 5.000000e-01 : f32
    %96 = vector.broadcast %cst_47 : f32 to vector<8x128xf32>
    %97 = arith.addf %95, %96 : vector<8x128xf32>
    %98 = arith.mulf %90, %97 : vector<8x128xf32>
    %99 = arith.truncf %98 : vector<8x128xf32> to vector<8x128xbf16>
    %c0_48 = arith.constant 0 : index
    %c0_49 = arith.constant 0 : index
    %100 = vector.load %arg12[%c0_48, %c0_49] : memref<256x64xbf16, #tpu.memory_space<vmem>>, vector<256x64xbf16>
    %c0_50 = arith.constant 0 : index
    %c0_51 = arith.constant 0 : index
    %101 = vector.load %arg11[%c0_50, %c0_51] : memref<16x8xbf16, #tpu.memory_space<vmem>>, vector<16x8xbf16>
    %cst_52 = arith.constant dense<0.000000e+00> : vector<16x128xf32>
    %102 = tpu.matmul %101, %99, %cst_52 {dimension_numbers = #tpu.dot_dimension_numbers<[1], [0], [0], [1], [0, 0, 1, 1], [], []>} : vector<16x8xbf16>, vector<8x128xbf16>, vector<16x128xf32> -> vector<16x128xf32>
    %103 = vector.extract_strided_slice %102 {offsets = [0, 0], sizes = [8, 128], strides = [1, 1]} : vector<16x128xf32> to vector<8x128xf32>
    %104 = vector.extract_strided_slice %102 {offsets = [8, 0], sizes = [8, 128], strides = [1, 1]} : vector<16x128xf32> to vector<8x128xf32>
    %105 = tpu.concatenate %103, %104 in 1 : vector<8x128xf32>, vector<8x128xf32> -> vector<8x256xf32>
    %106 = arith.truncf %105 : vector<8x256xf32> to vector<8x256xbf16>
    %cst_53 = arith.constant dense<0.000000e+00> : vector<8x64xf32>
    %107 = tpu.matmul %106, %100, %cst_53 {dimension_numbers = #tpu.dot_dimension_numbers<[1], [0], [0], [1], [0, 0, 1, 1], [], []>} : vector<8x256xbf16>, vector<256x64xbf16>, vector<8x64xf32> -> vector<8x64xf32>
    %c0_54 = arith.constant 0 : index
    %c0_55 = arith.constant 0 : index
    %108 = vector.load %arg13[%c0_54, %c0_55] : memref<1x64xf32, #tpu.memory_space<vmem>>, vector<1x64xf32>
    %109 = vector.broadcast %108 : vector<1x64xf32> to vector<8x64xf32>
    %110 = arith.addf %107, %109 : vector<8x64xf32>
    %cst_56 = arith.constant 5.000000e-01 : f32
    %111 = vector.broadcast %cst_56 : f32 to vector<8x64xf32>
    %112 = arith.mulf %111, %110 : vector<8x64xf32>
    %113 = math.tanh %112 : vector<8x64xf32>
    %cst_57 = arith.constant 5.000000e-01 : f32
    %114 = vector.broadcast %cst_57 : f32 to vector<8x64xf32>
    %115 = arith.mulf %114, %113 : vector<8x64xf32>
    %cst_58 = arith.constant 5.000000e-01 : f32
    %116 = vector.broadcast %cst_58 : f32 to vector<8x64xf32>
    %117 = arith.addf %115, %116 : vector<8x64xf32>
    %118 = arith.mulf %110, %117 : vector<8x64xf32>
    %119 = arith.truncf %118 : vector<8x64xf32> to vector<8x64xbf16>
    %c0_59 = arith.constant 0 : index
    %c0_60 = arith.constant 0 : index
    %120 = vector.load %arg14[%c0_59, %c0_60] : memref<64x128xbf16, #tpu.memory_space<vmem>>, vector<64x128xbf16>
    %cst_61 = arith.constant dense<0.000000e+00> : vector<8x128xf32>
    %121 = tpu.matmul %119, %120, %cst_61 {dimension_numbers = #tpu.dot_dimension_numbers<[1], [0], [0], [1], [0, 0, 1, 1], [], []>} : vector<8x64xbf16>, vector<64x128xbf16>, vector<8x128xf32> -> vector<8x128xf32>
    %c0_62 = arith.constant 0 : index
    %c0_63 = arith.constant 0 : index
    %122 = vector.load %arg15[%c0_62, %c0_63] : memref<1x128xf32, #tpu.memory_space<vmem>>, vector<1x128xf32>
    %123 = vector.broadcast %122 : vector<1x128xf32> to vector<8x128xf32>
    %124 = arith.addf %121, %123 : vector<8x128xf32>
    %c0_64 = arith.constant 0 : index
    %c0_65 = arith.constant 0 : index
    %c0_66 = arith.constant 0 : index
    %125 = vector.load %arg19[%c0_64, %c0_65, %c0_66] : memref<1x8x128xf32, #tpu.memory_space<vmem>>, vector<1x8x128xf32>
    %126 = vector.shape_cast %125 : vector<1x8x128xf32> to vector<8x128xf32>
    %127 = vector.shape_cast %124 : vector<8x128xf32> to vector<1x8x128xf32>
    tpu.vector_store %arg19[%c0_64, %c0_65, %c0_66], %127 {strides = array<i32>} : memref<1x8x128xf32, #tpu.memory_space<vmem>>, vector<1x8x128xf32>,
    return
  }
  func.func @transform_0(%arg0: i32) -> (i32, i32, i32) {
    %c0_i32 = arith.constant 0 : i32
    %c0_i32_0 = arith.constant 0 : i32
    %c0_i32_1 = arith.constant 0 : i32
    return %arg0, %c0_i32, %c0_i32_0 : i32, i32, i32
  }
  func.func @transform_1(%arg0: i32) -> (i32, i32) {
    %c0_i32 = arith.constant 0 : i32
    %c0_i32_0 = arith.constant 0 : i32
    %c0_i32_1 = arith.constant 0 : i32
    return %c0_i32, %c0_i32_0 : i32, i32
  }
  func.func @transform_2(%arg0: i32) -> (i32, i32) {
    %c0_i32 = arith.constant 0 : i32
    %c0_i32_0 = arith.constant 0 : i32
    %c0_i32_1 = arith.constant 0 : i32
    return %c0_i32, %c0_i32_0 : i32, i32
  }
  func.func @transform_3(%arg0: i32) -> (i32, i32) {
    %c0_i32 = arith.constant 0 : i32
    %c0_i32_0 = arith.constant 0 : i32
    %c0_i32_1 = arith.constant 0 : i32
    return %c0_i32, %c0_i32_0 : i32, i32
  }
  func.func @transform_4(%arg0: i32) -> (i32, i32) {
    %c0_i32 = arith.constant 0 : i32
    %c0_i32_0 = arith.constant 0 : i32
    %c0_i32_1 = arith.constant 0 : i32
    return %c0_i32, %c0_i32_0 : i32, i32
  }
  func.func @transform_5(%arg0: i32) -> (i32, i32) {
    %c0_i32 = arith.constant 0 : i32
    %c0_i32_0 = arith.constant 0 : i32
    %c0_i32_1 = arith.constant 0 : i32
    return %c0_i32, %c0_i32_0 : i32, i32
  }
  func.func @transform_6(%arg0: i32) -> (i32, i32) {
    %c0_i32 = arith.constant 0 : i32
    %c0_i32_0 = arith.constant 0 : i32
    %c0_i32_1 = arith.constant 0 : i32
    return %c0_i32, %c0_i32_0 : i32, i32
  }
  func.func @transform_7(%arg0: i32) -> (i32, i32) {
    %c0_i32 = arith.constant 0 : i32
    %c0_i32_0 = arith.constant 0 : i32
    %c0_i32_1 = arith.constant 0 : i32
    return %c0_i32, %c0_i32_0 : i32, i32
  }
  func.func @transform_8(%arg0: i32) -> (i32, i32) {
    %c0_i32 = arith.constant 0 : i32
    %c0_i32_0 = arith.constant 0 : i32
    %c0_i32_1 = arith.constant 0 : i32
    return %c0_i32, %c0_i32_0 : i32, i32
  }
  func.func @transform_9(%arg0: i32) -> (i32, i32) {
    %c0_i32 = arith.constant 0 : i32
    %c0_i32_0 = arith.constant 0 : i32
    %c0_i32_1 = arith.constant 0 : i32
    return %c0_i32, %c0_i32_0 : i32, i32
  }
  func.func @transform_10(%arg0: i32) -> (i32, i32) {
    %c0_i32 = arith.constant 0 : i32
    %c0_i32_0 = arith.constant 0 : i32
    %c0_i32_1 = arith.constant 0 : i32
    return %c0_i32, %c0_i32_0 : i32, i32
  }
  func.func @transform_11(%arg0: i32) -> (i32, i32) {
    %c0_i32 = arith.constant 0 : i32
    %c0_i32_0 = arith.constant 0 : i32
    %c0_i32_1 = arith.constant 0 : i32
    return %c0_i32, %c0_i32_0 : i32, i32
  }
  func.func @transform_12(%arg0: i32) -> (i32, i32) {
    %c0_i32 = arith.constant 0 : i32
    %c0_i32_0 = arith.constant 0 : i32
    %c0_i32_1 = arith.constant 0 : i32
    return %c0_i32, %c0_i32_0 : i32, i32
  }
  func.func @transform_13(%arg0: i32) -> (i32, i32) {
    %c0_i32 = arith.constant 0 : i32
    %c0_i32_0 = arith.constant 0 : i32
    %c0_i32_1 = arith.constant 0 : i32
    return %c0_i32, %c0_i32_0 : i32, i32
  }
  func.func @transform_14(%arg0: i32) -> (i32, i32) {
    %c0_i32 = arith.constant 0 : i32
    %c0_i32_0 = arith.constant 0 : i32
    %c0_i32_1 = arith.constant 0 : i32
    return %c0_i32, %c0_i32_0 : i32, i32
  }
  func.func @transform_18(%arg0: i32) -> (i32, i32, i32) {
    %c0_i32 = arith.constant 0 : i32
    %c0_i32_0 = arith.constant 0 : i32
    %c0_i32_1 = arith.constant 0 : i32
    return %arg0, %c0_i32, %c0_i32_0 : i32, i32, i32
  }
}

</mosaic_0001>

<bundles_post_ra>
// kernel: cnn_model_forward.1
= control target key start
LH: loop header
LB: loop body
LE: loop exit
PB: predicated region body
PF: predicated region fallthrough
CT: control target
= control target key end

     0   :  { %s4203_s0 = inlined_call_operand.vmem [shape: bf16[2,28,128], index: 0, kind: input, shape index: {}]   ;;  %s4204_s1 = inlined_call_operand.vmem [shape: bf16[80,28], index: 1, kind: input, shape index: {}]   ;;  %s4205_s2 = inlined_call_operand.hbm [shape: bf16[640,256], index: 2, kind: input, shape index: {}]   ;;  %s4206_s3 = inlined_call_operand.vmem [shape: f32[1,256], index: 3, kind: input, shape index: {}]   ;;  %s4207_s4 = inlined_call_operand.vmem [shape: bf16[24,16], index: 4, kind: input, shape index: {}]   ;;  %s4208_s5 = inlined_call_operand.vmem [shape: f32[1,256], index: 5, kind: input, shape index: {}]   ;;  %s4209_s6 = inlined_call_operand.vmem [shape: bf16[24,8], index: 6, kind: input, shape index: {}]   ;;  %s4210_s7 = inlined_call_operand.vmem [shape: f32[1,256], index: 7, kind: input, shape index: {}]   ;;  %s4211_s8 = inlined_call_operand.vmem [shape: bf16[24,8], index: 8, kind: input, shape index: {}]   ;;  %s4212_s9 = inlined_call_operand.vmem [shape: f32[1,128], index: 9, kind: input, shape index: {}]   ;;  %s4213_s10 = inlined_call_operand.vmem [shape: bf16[16,8], index: 10, kind: input, shape index: {}]   ;;  %s4214_s11 = inlined_call_operand.vmem [shape: bf16[256,64], index: 11, kind: input, shape index: {}]   ;;  %s4215_s12 = inlined_call_operand.vmem [shape: f32[1,64], index: 12, kind: input, shape index: {}]   ;;  %s4216_s13 = inlined_call_operand.hbm [shape: bf16[64,128], index: 13, kind: input, shape index: {}]   ;;  %s4217_s14 = inlined_call_operand.vmem [shape: f32[1,128], index: 14, kind: input, shape index: {}]   ;;  %s4218_s15 = inlined_call_operand.hbm [shape: bf16[768,256], index: 15, kind: input, shape index: {}]   ;;  %s4219_s16 = inlined_call_operand.hbm [shape: bf16[768,256], index: 16, kind: input, shape index: {}]   ;;  %s4220_s17 = inlined_call_operand.vmem [shape: bf16[768,128], index: 17, kind: input, shape index: {}]   ;;  %s4221_s18 = inlined_call_operand.vmem [shape: f32[2,8,128], index: 18, kind: output, shape index: {}]  }
   0x1   :  { %4232 = sst [smem:[#allocation31_spill]] %s4203_s0 }
   0x2   :  { %4233 = sst [smem:[#allocation32_spill]] %s4204_s1 }
   0x3   :  { %4234 = sst [smem:[#allocation33_spill]] %s4205_s2 }
   0x4   :  { %4235 = sst [smem:[#allocation34_spill]] %s4215_s12 }
   0x5   :  { %4236 = sst [smem:[#allocation35_spill]] %s4216_s13 }
   0x6   :  { %4237 = sst [smem:[#allocation36_spill]] %s4217_s14 }
   0x7   :  { %4238 = sst [smem:[#allocation37_spill]] %s4221_s18 }
   0x8   :  { %23 = vsyncpa [#allocation7], 0 }
   0x9   :  { %24 = vsyncpa [#allocation9], 0  ;;  %s3606_s27 = smov 0  }
   0xa LB: > { %4239 = sst [smem:[#allocation20_spill]] %s3489_s27  ;;  %s3491_s28 = smov [#allocation6]   ;;  %s3489_s27 = sphi %s3606_s27, %s30_s27  }
   0xb   : > { %s396_s29 = sshll.u32 %s3491_s28, 4  ;;  %s3612_s30 = sadd.s32 4294967295, %s3489_s27   ;;  %s397_s29 = int_to_ptr.vmem [resolvable:$true] %s396_s29 }
   0xc   : > { %p2864_p0 = scmp.ge.s32.totalorder %s3489_s27, 1  ;;  %p381_p1 = scmp.lt.s32.totalorder %s3489_s27, 3 }
   0xd   : > { %p4224_p3 = scmp.eq.s32.totalorder %s3612_s30, 0  ;;  %s3492_s19 = smov [#allocation8]  }
   0xe   : > { %p3616_p2 = pnand %p2864_p0, %p381_p1  ;;  %s439_s1 = sshll.u32 %s3492_s19, 4  ;;  %s3629_s1 = int_to_ptr.vmem [resolvable:$true] %s439_s1 }
   0xf   : > { %s4242_s2 = sld [smem:[#allocation33_spill]] }
  0x10   : > { %s4240_s0 = scalar_select %p3616_p2, 1, 0 }
  0x11   : > { %p3200_p4 = pneg %p3616_p2 }
  0x13   : > { %p3625_p5 = pnand %p4224_p3, %p3200_p4 }
  0x15   : > { %s3413_s23 = scalar_lea.hbm %s4242_s2, 10240  ;;  %p3415_p7 = pneg %p3625_p5 }
  0x16   : > { %p3414_p6 = scmp.ne.s32.totalorder %s4242_s2, %s3413_s23  ;;  %p3420_p10 = scmp.lt.u32.totalorder %s3413_s23, %s4242_s2 }
  0x18   : > { %p3416_p8 = pnand %p3415_p7, %p3414_p6 }
  0x1a   : > { %p3417_p9 = pneg %p3416_p8 }
  0x1c   : > { %p3422_p11 = pnand %p3420_p10, %p3417_p9 }
  0x1e   : > { %3425 = shalt.err (!%p3422_p11)
}
  0x1f   : > { %s3426_s19 = scalar_lea.vmem %s397_s29, 10240  ;;  %p3434_p1 = scmp.lt.s32.totalorder %s397_s29, %s397_s29 }
  0x20   : > { %p3427_p12 = scmp.ne.s32.totalorder %s397_s29, %s3426_s19  ;;  %p3435_p4 = scmp.lt.s32.totalorder %s3426_s19, %s3426_s19 }
  0x22   : > { %p3429_p13 = pnand %p3427_p12, %p3415_p7  ;;  %p3436_p3 = por %p3435_p4, %p3434_p1 }
  0x24   : > { %p3430_p0 = pneg %p3429_p13 }
  0x26   : > { %p3437_p2 = pnand %p3436_p3, %p3430_p0 }
  0x28   : > { %3440 = shalt.err (!%p3437_p2)
}
  0x29   : > { %s3493_s21 = smov 128   ;;  %s3494_s22 = smov 8  }
  0x2a   : > { %3203 = dma.hbm_to_vmem [thread:$0]  (!%p3625_p5), %s4242_s2, 10240, %s397_s29, [#allocation7], %s3493_s21, %s3493_s21, %s3494_s22  }
  0x2b   : > { %s4243_s13 = sld [smem:[#allocation35_spill]] }
  0x31   : > { %s3441_s28 = scalar_lea.hbm %s4243_s13, 512 }
  0x32   : > { %p3442_p6 = scmp.ne.s32.totalorder %s4243_s13, %s3441_s28  ;;  %p3448_p8 = scmp.lt.u32.totalorder %s3441_s28, %s4243_s13 }
  0x34   : > { %p3444_p2 = pnand %p3442_p6, %p3415_p7 }
  0x36   : > { %p3445_p3 = pneg %p3444_p2 }
  0x38   : > { %p3450_p9 = pnand %p3448_p8, %p3445_p3 }
  0x3a   : > { %3453 = shalt.err (!%p3450_p9)
}
  0x3b   : > { %s3454_s29 = scalar_lea.vmem %s3629_s1, 512  ;;  %p3462_p13 = scmp.lt.s32.totalorder %s3629_s1, %s3629_s1 }
  0x3c   : > { %p3455_p10 = scmp.ne.s32.totalorder %s3629_s1, %s3454_s29  ;;  %p3463_p0 = scmp.lt.s32.totalorder %s3454_s29, %s3454_s29 }
  0x3e   : > { %p3457_p11 = pnand %p3455_p10, %p3415_p7  ;;  %p3464_p1 = por %p3463_p0, %p3462_p13 }
  0x40   : > { %p3458_p12 = pneg %p3457_p11 }
  0x42   : > { %p3465_p4 = pnand %p3464_p1, %p3458_p12 }
  0x44   : > { %3468 = shalt.err (!%p3465_p4)
}
  0x45   : > { %s3495_s12 = smov 64   ;;  %s3496_s14 = smov 4  }
  0x46   : > { %3206 = dma.hbm_to_vmem [thread:$0]  (!%p3625_p5), %s4243_s13, 512, %s3629_s1, [#allocation9], %s3495_s12, %s3495_s12, %s3496_s14  }
  0x47   : > { %p4244_p6 = scmp.ne.s32.totalorder %s4240_s0, 0 }
  0x49   : > { %466 = sbr.rel (%p4244_p6) target bundleno = 3065 (0xbf9), region = 80 }
  0x50   : > { %p4245_p7 = scmp.eq.s32.totalorder %s3612_s30, 0 }
  0x52   : > { %3474 = dma.done.wait (%p4245_p7), [#allocation7], 10240   ;;  %p4246_p2 = pmov %p4245_p7 }
  0x54   : > { %3476 = vsyncadd (%p4246_p2), [#allocation7], 4294957056  ;;  %p4247_p3 = pmov %p4246_p2 }
  0x55   : > { %p4248_p8 = pmov %p4246_p2 }
  0x56   : > { %3478 = dma.done.wait (%p4247_p3), [#allocation9], 512  }
  0x57   : > { %3480 = vsyncadd (%p4248_p8), [#allocation9], 4294966784  ;;  %p517_p9 = scmp.lt.s32.totalorder %s3612_s30, 1  ;;  %s531_s20 = sld [smem:[#allocation0]]  }
  0x58   : > { %s3497_s1 = smov [#allocation2]   ;;  %s4249_s26 = sld [smem:[#allocation31_spill]] }
  0x59   : > { %s4279_s30 = smov (!%p517_p9, %s3612_s30), 1  ;;  %s539_s0 = sshll.u32 %s3497_s1, 4  ;;  %s540_s0 = int_to_ptr.vmem [resolvable:$true] %s539_s0 }
  0x5a   : > { %s3015_s22 = sshll.u32 %s4279_s30, 4  ;;  %s2873_s23 = sshll.u32 %s4279_s30, 3 }
  0x5b   : > { %s4250_s18 = sld [smem:[#allocation37_spill]]  ;;  %s3498_s14 = smov 256  }
  0x5c   : > { %543 = sst [smem:[#allocation11]] %s3498_s14  ;;  %s3499_s21 = smov 2  }
  0x5d   : > { %s2874_s27 = sshll.u32 %s531_s20, 26  ;;  %545 = sst [smem:[#allocation11 + $0x1]] %s3498_s14 }
  0x5e   : > { %s3693_s28 = scalar_lea.vmem %s4249_s26, %s3015_s22  ;;  %547 = sst [smem:[#allocation11 + $0x2]] %s3499_s21 }
  0x5f   : > { %s3700_s1 = sadd.s32 134217728, %s2874_s27  ;;  %s3500_s30 = smov 64  }
  0x60   : > { %549 = sst [smem:[#allocation11 + $0x3]] %s3500_s30  ;;  %s3501_s24 = smov 128  }
  0x61   : > { %s3698_s12 = scalar_lea.vmem %s4250_s18, %s2873_s23  ;;  %551 = sst [smem:[#allocation11 + $0x4]] %s3501_s24 }
  0x62   : > { %553 = sst [smem:[#allocation11 + $0x5]] %s3499_s21  ;;  %s3502_s22 = smov 4  }
  0x63   : > { %555 = sst [smem:[#allocation11 + $0x6]] %s3501_s24  ;;  %s3503_s23 = smov [#allocation5]  }
  0x64   : > { %557 = sst [smem:[#allocation11 + $0x7]] %s3500_s30  ;;  %s3504_s25 = smov [#allocation10]  }
  0x65   : > { %559 = sst [smem:[#allocation11 + $0x8]] %s3502_s22  ;;  %s3505_s19 = smov [#allocation3]  }
  0x66   : > { %561 = dma.general %s4218_s15, 12288, %s540_s0, %s3503_s23, %s3504_s25, [#allocation11], %s3700_s1, 0  }
  0x67   : > { %578 = sst [smem:[#allocation13]] %s3498_s14  ;;  %s574_s29 = sshll.u32 %s3505_s19, 4  ;;  %s575_s29 = int_to_ptr.vmem [resolvable:$true] %s574_s29 }
  0x68   : > { %580 = sst [smem:[#allocation13 + $0x1]] %s3498_s14  ;;  %s3506_s27 = smov [#allocation5 + $0x1]  }
  0x69   : > { %582 = sst [smem:[#allocation13 + $0x2]] %s3499_s21  ;;  %s3507_s2 = smov [#allocation12]  }
  0x6a   : > { %584 = sst [smem:[#allocation13 + $0x3]] %s3500_s30 }
  0x6b   : > { %586 = sst [smem:[#allocation13 + $0x4]] %s3501_s24 }
  0x6c   : > { %588 = sst [smem:[#allocation13 + $0x5]] %s3499_s21 }
  0x6d   : > { %590 = sst [smem:[#allocation13 + $0x6]] %s3501_s24 }
  0x6e   : > { %592 = sst [smem:[#allocation13 + $0x7]] %s3500_s30 }
  0x6f   : > { %594 = sst [smem:[#allocation13 + $0x8]] %s3502_s22 }
  0x70   : > { %596 = dma.general %s4219_s16, 12288, %s575_s29, %s3506_s27, %s3507_s2, [#allocation13], %s3700_s1, 0  }
  0x71   : > { %v3713_v0 = vld [vmem:[%s4220_s17] sm:$0xff]  ;;  %v3718_v1 = vld [vmem:[%s4220_s17 + $0x8] sm:$0xff]  ;;  %v3723_v2 = vld [vmem:[%s4220_s17 + $0x10] sm:$0xff] }
  0x72   : > { %v3728_v3 = vld [vmem:[%s4220_s17 + $0x18] sm:$0xff]  ;;  %v3733_v4 = vld [vmem:[%s4220_s17 + $0x20] sm:$0xff]  ;;  %v3738_v5 = vld [vmem:[%s4220_s17 + $0x28] sm:$0xff] }
  0x73   : > { %v3743_v6 = vld [vmem:[%s4220_s17 + $0x30] sm:$0xff]  ;;  %v3748_v7 = vld [vmem:[%s4220_s17 + $0x38] sm:$0xff]  ;;  %v3753_v8 = vld [vmem:[%s4220_s17 + $0x40] sm:$0xff] }
  0x74   : > { %v3758_v9 = vld [vmem:[%s4220_s17 + $0x48] sm:$0xff]  ;;  %v3763_v10 = vld [vmem:[%s4220_s17 + $0x50] sm:$0xff]  ;;  %v3768_v11 = vld [vmem:[%s4220_s17 + $0x58] sm:$0xff] }
  0x75   : > { %v3773_v12 = vld [vmem:[%s4220_s17 + $0x60] sm:$0xff]  ;;  %v3778_v13 = vld [vmem:[%s4220_s17 + $0x68] sm:$0xff]  ;;  %v3783_v14 = vld [vmem:[%s4220_s17 + $0x70] sm:$0xff] }
  0x76   : > { %v3788_v15 = vld [vmem:[%s4220_s17 + $0x78] sm:$0xff]  ;;  %v3793_v16 = vld [vmem:[%s4220_s17 + $0x80] sm:$0xff]  ;;  %v3798_v17 = vld [vmem:[%s4220_s17 + $0x88] sm:$0xff] }
  0x77   : > { %v3803_v18 = vld [vmem:[%s4220_s17 + $0x90] sm:$0xff]  ;;  %v3808_v19 = vld [vmem:[%s4220_s17 + $0x98] sm:$0xff]  ;;  %v3813_v20 = vld [vmem:[%s4220_s17 + $0xa0] sm:$0xff] }
  0x78   : > { %v3818_v21 = vld [vmem:[%s4220_s17 + $0xa8] sm:$0xff]  ;;  %v3823_v22 = vld [vmem:[%s4220_s17 + $0xb0] sm:$0xff]  ;;  %v3828_v23 = vld [vmem:[%s4220_s17 + $0xb8] sm:$0xff] }
  0x79   : > { %v3833_v24 = vld [vmem:[%s4220_s17 + $0xc0] sm:$0xff]  ;;  %v3838_v25 = vld [vmem:[%s4220_s17 + $0xc8] sm:$0xff]  ;;  %v3843_v26 = vld [vmem:[%s4220_s17 + $0xd0] sm:$0xff] }
  0x7a   : > { %v3848_v27 = vld [vmem:[%s4220_s17 + $0xd8] sm:$0xff]  ;;  %v3853_v28 = vld [vmem:[%s4220_s17 + $0xe0] sm:$0xff]  ;;  %v3858_v29 = vld [vmem:[%s4220_s17 + $0xe8] sm:$0xff] }
  0x7b   : > { %v3863_v30 = vld [vmem:[%s4220_s17 + $0xf0] sm:$0xff]  ;;  %v3868_v31 = vld [vmem:[%s4220_s17 + $0xf8] sm:$0xff]  ;;  %v3873_v32 = vld [vmem:[%s4220_s17 + $0x100] sm:$0xff] }
  0x7c   : > { %v3878_v33 = vld [vmem:[%s4220_s17 + $0x108] sm:$0xff]  ;;  %v3883_v34 = vld [vmem:[%s4220_s17 + $0x110] sm:$0xff]  ;;  %v3888_v35 = vld [vmem:[%s4220_s17 + $0x118] sm:$0xff] }
  0x7d   : > { %4251 = vst [vmem:[#allocation21_spill] sm:$0xff] %v3888_v35  ;;  %v3893_v36 = vld [vmem:[%s4220_s17 + $0x120] sm:$0xff]  ;;  %v3898_v37 = vld [vmem:[%s4220_s17 + $0x128] sm:$0xff]  ;;  %v3903_v38 = vld [vmem:[%s4220_s17 + $0x130] sm:$0xff] }
  0x7e   : > { %4252 = vst [vmem:[#allocation22_spill] sm:$0xff] %v3893_v36  ;;  %4253 = vst [vmem:[#allocation23_spill] sm:$0xff] %v3898_v37  ;;  %v3908_v39 = vld [vmem:[%s4220_s17 + $0x138] sm:$0xff]  ;;  %v3913_v40 = vld [vmem:[%s4220_s17 + $0x140] sm:$0xff] }
  0x7f   : > { %4254 = vst [vmem:[#allocation24_spill] sm:$0xff] %v3903_v38  ;;  %4255 = vst [vmem:[#allocation25_spill] sm:$0xff] %v3908_v39  ;;  %v3918_v41 = vld [vmem:[%s4220_s17 + $0x148] sm:$0xff]  ;;  %v3923_v42 = vld [vmem:[%s4220_s17 + $0x150] sm:$0xff] }
  0x80   : > { %v3928_v43 = vld [vmem:[%s4220_s17 + $0x158] sm:$0xff]  ;;  %v3933_v44 = vld [vmem:[%s4220_s17 + $0x160] sm:$0xff]  ;;  %v3938_v45 = vld [vmem:[%s4220_s17 + $0x168] sm:$0xff] }
  0x81   : > { %4256 = vst [vmem:[#allocation26_spill] sm:$0xff] %v3928_v43  ;;  %4257 = vst [vmem:[#allocation27_spill] sm:$0xff] %v3933_v44  ;;  %v3943_v46 = vld [vmem:[%s4220_s17 + $0x170] sm:$0xff]  ;;  %v3948_v47 = vld [vmem:[%s4220_s17 + $0x178] sm:$0xff] }
  0x82   : > { %4258 = vst [vmem:[#allocation28_spill] sm:$0xff] %v3938_v45  ;;  %4259 = vst [vmem:[#allocation29_spill] sm:$0xff] %v3943_v46 }
  0x83   : > { %4260 = vst [vmem:[#allocation30_spill] sm:$0xff] %v3948_v47 }
  0x84   : > { %733 = vsyncadd [#allocation5 + $0x2], 6144  ;;  %v3239_v48 = vld [vmem:[%s3693_s28] sm:$0xff]   ;;  %v4228_v49 = vmov 0.0   ;;  %v3240_v50 = vld [vmem:[%s3693_s28 + $0x8] sm:$0x3f]  }
  0x85   : > { %3118 = vmatprep.subr.bf16.mxu0 %v4228_v49  ;;  %vm880_vm0 = vcmask 1045504   ;;  %vm3509_vm1 = vmmov 0   ;;  %s4261_s20 = sld [smem:[#allocation32_spill]]  ;;  %vm864_vm2 = vcmask 228352   ;;  %v3246_v53 = vld [vmem:[#allocation6 + $0x4] ss:$8 sps:$4 sm:$0xff]  }
  0x86   : > { %3119 = vmatpush3.bf16.msra.mxu0 %v3239_v48  ;;  %3122 = vmatprep.mubr.msk.bf16.mxu0 %vm3509_vm1, %v4228_v49  ;;  %v882_v51 = vsel %vm880_vm0, %v3240_v50, 0  ;;  %v3248_v54 = vld [vmem:[#allocation6] ss:$8 sps:$4 sm:$0xff]   ;;  %v3249_v55 = vld [vmem:[#allocation6 + $0x14] ss:$8 sps:$4 sm:$0xff]  }
  0x87   : > { %3120 = vmatprep.subr.bf16.mxu0 %v4228_v49  ;;  %1374 = vmatprep.subr.bf16.mxu1 %v3246_v53  ;;  %v3251_v56 = vld [vmem:[#allocation6 + $0x10] ss:$8 sps:$4 sm:$0xff]   ;;  %v3252_v57 = vld [vmem:[#allocation6 + $0x24] ss:$8 sps:$4 sm:$0xff]   ;;  %v3254_v59 = vld [vmem:[#allocation6 + $0x20] ss:$8 sps:$4 sm:$0xff]  }
  0x88   : > { %1375 = vmatpush1.bf16.msra.mxu1 %v3248_v54  ;;  %v3255_v60 = vld [vmem:[#allocation6 + $0x34] ss:$8 sps:$4 sm:$0xff]   ;;  %v3257_v61 = vld [vmem:[#allocation6 + $0x30] ss:$8 sps:$4 sm:$0xff]   ;;  %v3258_v62 = vld [vmem:[#allocation6 + $0x44] ss:$8 sps:$4 sm:$0xff]  }
  0x89   : > { %1376 = vmatprep.subr.bf16.mxu1 %v3249_v55  ;;  %v3260_v48 = vld [vmem:[#allocation6 + $0x40] ss:$8 sps:$4 sm:$0xff]   ;;  %v3261_v50 = vld [vmem:[#allocation6 + $0x54] ss:$8 sps:$4 sm:$0xff]  }
  0x8a   : > { %3121 = vmatpush3.bf16.msra.mxu0 %v882_v51  ;;  %v3263_v51 = vld [vmem:[#allocation6 + $0x50] ss:$8 sps:$4 sm:$0xff]   ;;  %v3266_v54 = vld [vmem:[#allocation6 + $0x60] ss:$8 sps:$4 sm:$0xff]   ;;  %v3267_v55 = vld [vmem:[#allocation6 + $0x74] ss:$8 sps:$4 sm:$0xff]  }
  0x8b   : > { %v3241_v52 = vld [vmem:[%s4261_s20] sm:$0xff]   ;;  %v3242_v58 = vld [vmem:[%s4261_s20 + $0x8] sm:$0xff]   ;;  %v3243_v63 = vld [vmem:[%s4261_s20 + $0x10] sm:$0xff]  }
  0x8c   : > { %1377 = vmatpush1.bf16.msra.mxu1 %v3251_v56  ;;  %v3244_v53 = vld [vmem:[%s4261_s20 + $0x18] sm:$0xff]  }
  0x8d   : > { %3123 = vmatmul.mubr.msk.bf16.vlgmr.msra.gmra.mrb[0].mxu0 %vm864_vm2, %v3241_v52  ;;  %1378 = vmatprep.subr.bf16.mxu1 %v3252_v57  ;;  %v3264_v52 = vld [vmem:[#allocation6 + $0x64] ss:$8 sps:$4 sm:$0xff]   ;;  %v3269_v56 = vld [vmem:[#allocation6 + $0x70] ss:$8 sps:$4 sm:$0xff]   ;;  %v3299_v39 = vld [vmem:[#allocation6 + $0x114] ss:$8 sps:$4 sm:$0xff]  }
  0x8e   : > { %3126 = vmatprep.mubr.msk.bf16.mxu0 %vm3509_vm1, %v4228_v49  ;;  %v3270_v57 = vld [vmem:[#allocation6 + $0x84] ss:$8 sps:$4 sm:$0xff]  }
  0x90   : > { %1379 = vmatpush1.bf16.msra.mxu1 %v3254_v59  ;;  %v3272_v59 = vld [vmem:[#allocation6 + $0x80] ss:$8 sps:$4 sm:$0xff]  }
  0x91   : > { %1380 = vmatprep.subr.bf16.mxu1 %v3255_v60  ;;  %v3273_v60 = vld [vmem:[#allocation6 + $0x94] ss:$8 sps:$4 sm:$0xff]  }
  0x94   : > { %1381 = vmatpush1.bf16.msra.mxu1 %v3257_v61  ;;  %v3275_v61 = vld [vmem:[#allocation6 + $0x90] ss:$8 sps:$4 sm:$0xff]  }
  0x95   : > { %3127 = vmatmul.mubr.msk.bf16.gmra.mrb[4].mxu0 %vm864_vm2, %v3242_v58  ;;  %1382 = vmatprep.subr.bf16.mxu1 %v3258_v62  ;;  %v3245_v58 = vld [vmem:[%s4261_s20 + $0x20] sm:$0xff]  }
  0x96   : > { %3130 = vmatprep.mubr.msk.bf16.mxu0 %vm3509_vm1, %v4228_v49  ;;  %v3276_v62 = vld [vmem:[#allocation6 + $0xa4] ss:$8 sps:$4 sm:$0xff]  }
  0x98   : > { %1383 = vmatpush1.bf16.msra.mxu1 %v3260_v48  ;;  %v3279_v48 = vld [vmem:[#allocation6 + $0xb4] ss:$8 sps:$4 sm:$0xff]  }
  0x99   : > { %1384 = vmatprep.subr.bf16.mxu1 %v3261_v50  ;;  %v3281_v50 = vld [vmem:[#allocation6 + $0xb0] ss:$8 sps:$4 sm:$0xff]  }
  0x9c   : > { %1385 = vmatpush1.bf16.msra.mxu1 %v3263_v51  ;;  %v3282_v51 = vld [vmem:[#allocation6 + $0xc4] ss:$8 sps:$4 sm:$0xff]  }
  0x9d   : > { %3131 = vmatmul.mubr.msk.bf16.gmra.mrb[8].mxu0 %vm864_vm2, %v3243_v63  ;;  %1386 = vmatprep.subr.bf16.mxu1 %v3264_v52  ;;  %v3278_v63 = vld [vmem:[#allocation6 + $0xa0] ss:$8 sps:$4 sm:$0xff]  }
  0x9e   : > { %3134 = vmatprep.mubr.msk.bf16.mxu0 %vm3509_vm1, %v4228_v49  ;;  %v3284_v52 = vld [vmem:[#allocation6 + $0xc0] ss:$8 sps:$4 sm:$0xff]  }
  0xa0   : > { %1387 = vmatpush1.bf16.msra.mxu1 %v3266_v54  ;;  %v3287_v54 = vld [vmem:[#allocation6 + $0xd0] ss:$8 sps:$4 sm:$0xff]  }
  0xa1   : > { %1388 = vmatprep.subr.bf16.mxu1 %v3267_v55  ;;  %v3288_v55 = vld [vmem:[#allocation6 + $0xe4] ss:$8 sps:$4 sm:$0xff]  }
  0xa4   : > { %1389 = vmatpush1.bf16.msra.mxu1 %v3269_v56  ;;  %v3290_v56 = vld [vmem:[#allocation6 + $0xe0] ss:$8 sps:$4 sm:$0xff]  }
  0xa5   : > { %3135 = vmatmul.mubr.msk.bf16.gmra.mrb[12].mxu0 %vm864_vm2, %v3244_v53  ;;  %1390 = vmatprep.subr.bf16.mxu1 %v3270_v57  ;;  %v3285_v53 = vld [vmem:[#allocation6 + $0xd4] ss:$8 sps:$4 sm:$0xff]  }
  0xa6   : > { %3138 = vmatprep.mubr.msk.bf16.mxu0 %vm3509_vm1, %v4228_v49  ;;  %v3291_v57 = vld [vmem:[#allocation6 + $0xf4] ss:$8 sps:$4 sm:$0xff]   ;;  %v3294_v49 = vld [vmem:[#allocation6 + $0x100] ss:$8 sps:$4 sm:$0xff]  }
  0xa8   : > { %1391 = vmatpush1.bf16.msra.mxu1 %v3272_v59  ;;  %v3296_v59 = vld [vmem:[#allocation6 + $0x104] ss:$8 sps:$4 sm:$0xff]  }
  0xa9   : > { %1392 = vmatprep.subr.bf16.mxu1 %v3273_v60 }
  0xac   : > { %1393 = vmatpush1.bf16.msra.mxu1 %v3275_v61 }
  0xad   : > { %3139 = vmatmul.mubr.msk.bf16.gmra.mrb[16].mxu0 %vm864_vm2, %v3245_v58  ;;  %1394 = vmatprep.subr.bf16.mxu1 %v3276_v62  ;;  %v3293_v58 = vld [vmem:[#allocation6 + $0xf0] ss:$8 sps:$4 sm:$0xff]  }
  0xb0   : > { %1395 = vmatpush1.bf16.msra.mxu1 %v3278_v63 }
  0xb1   : > { %1396 = vmatprep.subr.bf16.mxu1 %v3279_v48 }
  0xb4   : > { %1397 = vmatpush1.bf16.msra.mxu1 %v3281_v50 }
  0xb5   : > { %1398 = vmatprep.subr.bf16.mxu1 %v3282_v51 }
  0xb8   : > { %1399 = vmatpush1.bf16.msra.mxu1 %v3284_v52 }
  0xb9   : > { %1400 = vmatprep.subr.bf16.mxu1 %v3285_v53 }
  0xbc   : > { %1401 = vmatpush1.bf16.msra.mxu1 %v3287_v54 }
  0xbd   : > { %1402 = vmatprep.subr.bf16.mxu1 %v3288_v55  ;;  %v3297_v55 = vld [vmem:[#allocation6 + $0x110] ss:$8 sps:$4 sm:$0xff]  }
  0xc0   : > { %1403 = vmatpush1.bf16.msra.mxu1 %v3290_v56  ;;  %v3302_v56 = vld [vmem:[#allocation6 + $0x124] ss:$8 sps:$4 sm:$0xff]  }
  0xc1   : > { %1404 = vmatprep.subr.bf16.mxu1 %v3291_v57 }
  0xc4   : > { %1405 = vmatpush1.bf16.msra.mxu1 %v3293_v58 }
  0xc5   : > { %1417 = vmatprep.subr.bf16.mxu1 %v3296_v59 }
 0x160   : > { %v918_v60 = vpop.f32.mrb[0].mxu0 }
 0x161   : > { %v3124_v61 = vpop.f32.mrb[1].mxu0 }
 0x162   : > { %v921_v62 = vpop.f32.mrb[2].mxu0 }
 0x163   : > { %v957_v63 = vpack.c.bf16 %v921_v62, %v918_v60  ;;  %v3125_v48 = vpop.f32.mrb[3].mxu0  ;;  %v3300_v60 = vld [vmem:[#allocation6 + $0x120] ss:$8 sps:$4 sm:$0xff]  }
 0x164   : > { %v3305_v48 = vld [vmem:[#allocation6 + $0x134] ss:$8 sps:$4 sm:$0xff]  }
 0x168   : > { %v926_v50 = vpop.f32.mrb[4].mxu0 }
 0x169   : > { %v3128_v51 = vpop.f32.mrb[5].mxu0 }
 0x16a   : > { %v929_v52 = vpop.f32.mrb[6].mxu0 }
 0x16b   : > { %v3129_v53 = vpop.f32.mrb[7].mxu0  ;;  %v958_v54 = vpack.c.bf16 %v929_v52, %v926_v50  ;;  %v3303_v50 = vld [vmem:[#allocation6 + $0x130] ss:$8 sps:$4 sm:$0xff]   ;;  %v3306_v52 = vld [vmem:[#allocation6 + $0x140] ss:$8 sps:$4 sm:$0xff]  }
 0x16d   : > { %1406 = vmatprep.mubr.bf16.mxu1 %v958_v54 }
 0x16e   : > { %1407 = vmatmul.mubr.bf16.vlgmr.msra.gmra.mrb[0].mxu1 %v957_v63 }
 0x16f   : > { %1418 = vmatpush1.bf16.msra.mxu1 %v3294_v49  ;;  %v3308_v49 = vld [vmem:[#allocation6 + $0x144] ss:$8 sps:$4 sm:$0xff]  }
 0x170   : > { %1419 = vmatprep.subr.bf16.mxu1 %v3299_v39  ;;  %v3984_v57 = vpop.f32.mrb[8].mxu0 }
 0x171   : > { %v3132_v58 = vpop.f32.mrb[9].mxu0 }
 0x172   : > { %v3986_v59 = vpop.f32.mrb[10].mxu0  ;;  %v3309_v58 = vld [vmem:[#allocation6 + $0x150] ss:$8 sps:$4 sm:$0xff]  }
 0x173   : > { %1420 = vmatpush1.bf16.msra.mxu1 %v3297_v55  ;;  %v3133_v62 = vpop.f32.mrb[11].mxu0  ;;  %v3311_v55 = vld [vmem:[#allocation6 + $0x154] ss:$8 sps:$4 sm:$0xff]  }
 0x174   : > { %1421 = vmatprep.subr.bf16.mxu1 %v3302_v56  ;;  %v3314_v62 = vld [vmem:[#allocation6 + $0x164] ss:$8 sps:$4 sm:$0xff]  }
 0x177   : > { %1422 = vmatpush1.bf16.msra.mxu1 %v3300_v60 }
 0x178   : > { %1423 = vmatprep.subr.bf16.mxu1 %v3305_v48  ;;  %v942_v63 = vpop.f32.mrb[12].mxu0  ;;  %v3312_v48 = vld [vmem:[#allocation6 + $0x160] ss:$8 sps:$4 sm:$0xff]  }
 0x179   : > { %v3136_v39 = vpop.f32.mrb[13].mxu0 }
 0x17a   : > { %v945_v51 = vpop.f32.mrb[14].mxu0 }
 0x17b   : > { %1424 = vmatpush1.bf16.msra.mxu1 %v3303_v50  ;;  %v960_v53 = vpack.c.bf16 %v945_v51, %v942_v63  ;;  %v3137_v54 = vpop.f32.mrb[15].mxu0  ;;  %v3317_v63 = vld [vmem:[#allocation6 + $0x174] ss:$8 sps:$4 sm:$0xff]   ;;  %v3320_v51 = vld [vmem:[#allocation6 + $0x184] ss:$8 sps:$4 sm:$0xff]  }
 0x17c   : > { %1425 = vmatprep.subr.bf16.mxu1 %v3308_v49  ;;  %v3315_v49 = vld [vmem:[#allocation6 + $0x170] ss:$8 sps:$4 sm:$0xff]  }
 0x17d   : > { %1449 = vmatprep.mubr.bf16.mxu1 %v960_v53  ;;  %v3323_v53 = vld [vmem:[#allocation6 + $0x194] ss:$8 sps:$4 sm:$0xff]   ;;  %v3321_v54 = vld [vmem:[#allocation6 + $0x190] ss:$8 sps:$4 sm:$0xff]  }
 0x17f   : > { %1426 = vmatpush1.bf16.msra.mxu1 %v3306_v52  ;;  %v3318_v52 = vld [vmem:[#allocation6 + $0x180] ss:$8 sps:$4 sm:$0xff]  }
 0x180   : > { %1427 = vmatprep.subr.bf16.mxu1 %v3311_v55  ;;  %v3990_v56 = vpop.f32.mrb[16].mxu0  ;;  %v3326_v55 = vld [vmem:[#allocation6 + $0x1a4] ss:$8 sps:$4 sm:$0xff]  }
 0x181   : > { %v3140_v60 = vpop.f32.mrb[17].mxu0 }
 0x182   : > { %v3992_v61 = vpop.f32.mrb[18].mxu0  ;;  %v3329_v60 = vld [vmem:[#allocation6 + $0x1b4] ss:$8 sps:$4 sm:$0xff]  }
 0x183   : > { %1428 = vmatpush1.bf16.msra.mxu1 %v3309_v58  ;;  %v961_v50 = vpack.c.bf16 %v3992_v61, %v3990_v56  ;;  %v3141_v39 = vpop.f32.mrb[19].mxu0  ;;  %v3324_v58 = vld [vmem:[#allocation6 + $0x1a0] ss:$8 sps:$4 sm:$0xff]  }
 0x184   : > { %1429 = vmatprep.subr.bf16.mxu1 %v3314_v62  ;;  %v3327_v39 = vld [vmem:[#allocation6 + $0x1b0] ss:$8 sps:$4 sm:$0xff]   ;;  %v3332_v62 = vld [vmem:[#allocation6 + $0x1c4] ss:$8 sps:$4 sm:$0xff]  }
 0x187   : > { %1430 = vmatpush1.bf16.msra.mxu1 %v3312_v48  ;;  %v3330_v48 = vld [vmem:[#allocation6 + $0x1c0] ss:$8 sps:$4 sm:$0xff]  }
 0x188   : > { %1431 = vmatprep.subr.bf16.mxu1 %v3317_v63  ;;  %v3335_v63 = vld [vmem:[#allocation6 + $0x1d4] ss:$8 sps:$4 sm:$0xff]  }
 0x18b   : > { %1432 = vmatpush1.bf16.msra.mxu1 %v3315_v49  ;;  %v3333_v49 = vld [vmem:[#allocation6 + $0x1d0] ss:$8 sps:$4 sm:$0xff]  }
 0x18c   : > { %1433 = vmatprep.subr.bf16.mxu1 %v3320_v51  ;;  %v3338_v51 = vld [vmem:[#allocation6 + $0x1e4] ss:$8 sps:$4 sm:$0xff]  }
 0x18f   : > { %1434 = vmatpush1.bf16.msra.mxu1 %v3318_v52  ;;  %v3336_v52 = vld [vmem:[#allocation6 + $0x1e0] ss:$8 sps:$4 sm:$0xff]  }
 0x190   : > { %1435 = vmatprep.subr.bf16.mxu1 %v3323_v53  ;;  %v3341_v53 = vld [vmem:[#allocation6 + $0x1f4] ss:$8 sps:$4 sm:$0xff]  }
 0x193   : > { %1436 = vmatpush1.bf16.msra.mxu1 %v3321_v54  ;;  %v3339_v54 = vld [vmem:[#allocation6 + $0x1f0] ss:$8 sps:$4 sm:$0xff]  }
 0x194   : > { %1437 = vmatprep.subr.bf16.mxu1 %v3326_v55  ;;  %v3344_v55 = vld [vmem:[#allocation6 + $0x204] ss:$8 sps:$4 sm:$0xff]  }
 0x197   : > { %1438 = vmatpush1.bf16.msra.mxu1 %v3324_v58  ;;  %v3342_v58 = vld [vmem:[#allocation6 + $0x200] ss:$8 sps:$4 sm:$0xff]  }
 0x198   : > { %1439 = vmatprep.subr.bf16.mxu1 %v3329_v60  ;;  %v3347_v60 = vld [vmem:[#allocation6 + $0x214] ss:$8 sps:$4 sm:$0xff]  }
 0x19b   : > { %1440 = vmatpush1.bf16.msra.mxu1 %v3327_v39  ;;  %v4262_v39 = vpack.c.bf16 %v3986_v59, %v3984_v57  ;;  %v3359_v57 = vld [vmem:[#allocation6 + $0x254] ss:$8 sps:$4 sm:$0xff]   ;;  %v3357_v59 = vld [vmem:[#allocation6 + $0x250] ss:$8 sps:$4 sm:$0xff]  }
 0x19c   : > { %1441 = vmatprep.subr.bf16.mxu1 %v3332_v62  ;;  %v3345_v62 = vld [vmem:[#allocation6 + $0x210] ss:$8 sps:$4 sm:$0xff]  }
 0x19f   : > { %1442 = vmatpush1.bf16.msra.mxu1 %v3330_v48  ;;  %v4230_v48 = vmov 0  }
 0x1a0   : > { %1443 = vmatprep.subr.bf16.mxu1 %v3335_v63  ;;  %v3350_v63 = vld [vmem:[#allocation6 + $0x224] ss:$8 sps:$4 sm:$0xff]  }
 0x1a3   : > { %1444 = vmatpush1.bf16.msra.mxu1 %v3333_v49  ;;  %v3348_v49 = vld [vmem:[#allocation6 + $0x220] ss:$8 sps:$4 sm:$0xff]  }
 0x1a4   : > { %1445 = vmatprep.subr.bf16.mxu1 %v3338_v51  ;;  %v3353_v51 = vld [vmem:[#allocation6 + $0x234] ss:$8 sps:$4 sm:$0xff]  }
 0x1a7   : > { %1446 = vmatpush1.bf16.msra.mxu1 %v3336_v52  ;;  %v3351_v52 = vld [vmem:[#allocation6 + $0x230] ss:$8 sps:$4 sm:$0xff]  }
 0x1a8   : > { %1447 = vmatprep.subr.bf16.mxu1 %v3341_v53  ;;  %v3356_v53 = vld [vmem:[#allocation6 + $0x244] ss:$8 sps:$4 sm:$0xff]  }
 0x1ab   : > { %1448 = vmatpush1.bf16.msra.mxu1 %v3339_v54  ;;  %v3354_v54 = vld [vmem:[#allocation6 + $0x240] ss:$8 sps:$4 sm:$0xff]  }
 0x1ac   : > { %1460 = vmatprep.subr.bf16.mxu1 %v3344_v55  ;;  %v3362_v55 = vld [vmem:[#allocation6 + $0x264] ss:$8 sps:$4 sm:$0xff]  }
 0x1ae   : > { %1450 = vmatmul.mubr.bf16.vlgmr.msra.gmra.mrb[0].mxu1 %v4262_v39  ;;  %v3363_v39 = vld [vmem:[#allocation6 + $0x270] ss:$8 sps:$4 sm:$0xff]  }
 0x1af   : > { %1461 = vmatpush1.bf16.msra.mxu1 %v3342_v58  ;;  %1492 = vmatprep.mubr.bf16.mxu1 %v4230_v48  ;;  %v3360_v58 = vld [vmem:[#allocation6 + $0x260] ss:$8 sps:$4 sm:$0xff]  }
 0x1b0   : > { %1462 = vmatprep.subr.bf16.mxu1 %v3347_v60  ;;  %v3365_v60 = vld [vmem:[#allocation6 + $0x274] ss:$8 sps:$4 sm:$0xff]  }
 0x1b3   : > { %1463 = vmatpush1.bf16.msra.mxu1 %v3345_v62  ;;  %v964_v62 = vlaneseq }
 0x1b4   : > { %1464 = vmatprep.subr.bf16.mxu1 %v3350_v63 }
 0x1b5   : > { %v965_v63 = vshrl.u32 %v964_v62, 7 }
 0x1b7   : > { %1465 = vmatpush1.bf16.msra.mxu1 %v3348_v49  ;;  %v4003_v49 = vsub.s32 0, %v965_v63 }
 0x1b8   : > { %1466 = vmatprep.subr.bf16.mxu1 %v3353_v51  ;;  %v962_v51 = vld [vmem:[%s4206_s3] sm:$0x3] }
 0x1bb   : > { %1467 = vmatpush1.bf16.msra.mxu1 %v3351_v52  ;;  %v4008_v52 = vsub.s32 1, %v965_v63 }
 0x1bc   : > { %1468 = vmatprep.subr.bf16.mxu1 %v3356_v53  ;;  %v967_v53 = vrot.slane %v962_v51, %v4003_v49 }
 0x1bf   : > { %1469 = vmatpush1.bf16.msra.mxu1 %v3354_v54  ;;  %v971_v54 = vrot.slane %v962_v51, %v4008_v52 }
 0x1c0   : > { %1470 = vmatprep.subr.bf16.mxu1 %v3359_v57 }
 0x1c3   : > { %1471 = vmatpush1.bf16.msra.mxu1 %v3357_v59 }
 0x1c4   : > { %1472 = vmatprep.subr.bf16.mxu1 %v3362_v55 }
 0x1c7   : > { %1473 = vmatpush1.bf16.msra.mxu1 %v3360_v58 }
 0x1c8   : > { %1474 = vmatprep.subr.bf16.mxu1 %v3365_v60 }
 0x1cb   : > { %1475 = vmatpush1.bf16.msra.mxu1 %v3363_v39 }
 0x1ce   : > { %1493 = vmatmul.mubr.bf16.vlgmr.msra.gmra.mrb[0].mxu1 %v961_v50 }
 0x2a1   : > { %v1494_v57 = vpop.f32.mrb[0].mxu1 }
 0x2a2   : > { %v3160_v59 = vadd.f32 %v1494_v57, %v967_v53  ;;  %v1496_v55 = vpop.f32.mrb[1].mxu1 }
 0x2a3   : > { %v3161_v58 = vadd.f32 %v1496_v55, %v971_v54  ;;  %v1498_v61 = vpop.f32.mrb[2].mxu1 }
 0x2a4   : > { %v1503_v56 = vmul.f32 0.5, %v3160_v59  ;;  %v3162_v50 = vadd.f32 %v1498_v61, %v967_v53  ;;  %v1500_v60 = vpop.f32.mrb[3].mxu1 }
 0x2a5   : > { %v1504_v39 = vmul.f32 0.5, %v3161_v58  ;;  %v3163_v62 = vadd.f32 %v1500_v60, %v971_v54 }
 0x2a6   : > { %3366 = vtanh.f32 %v1503_v56  ;;  %v1505_v48 = vmul.f32 0.5, %v3162_v50 }
 0x2a7   : > { %3368 = vtanh.f32 %v1504_v39  ;;  %v1506_v47 = vmul.f32 0.5, %v3163_v62 }
 0x2a8   : > { %3370 = vtanh.f32 %v1505_v48 }
 0x2a9   : > { %3372 = vtanh.f32 %v1506_v47 }
 0x2b0   : > { %v3367_v63 = vpop.eup %3366 }
 0x2b1   : > { %v3369_v38 = vpop.eup %3368  ;;  %v1511_v46 = vmul.f32 0.5, %v3367_v63 }
 0x2b2   : > { %v3371_v51 = vpop.eup %3370  ;;  %v1512_v37 = vmul.f32 0.5, %v3369_v38 }
 0x2b3   : > { %v3373_v57 = vpop.eup %3372  ;;  %v1515_v45 = vadd.f32 0.5, %v1511_v46  ;;  %v1513_v55 = vmul.f32 0.5, %v3371_v51 }
 0x2b4   : > { %v1516_v36 = vadd.f32 0.5, %v1512_v37  ;;  %v1514_v44 = vmul.f32 0.5, %v3373_v57 }
 0x2b5   : > { %v1517_v53 = vadd.f32 0.5, %v1513_v55  ;;  %v1519_v35 = vmul.f32 %v3160_v59, %v1515_v45 }
 0x2b6   : > { %v1518_v61 = vadd.f32 0.5, %v1514_v44  ;;  %v1520_v56 = vmul.f32 %v3161_v58, %v1516_v36 }
 0x2b7   : > { %v1521_v54 = vmul.f32 %v3162_v50, %v1517_v53 }
 0x2b8   : > { %v1522_v60 = vmul.f32 %v3163_v62, %v1518_v61 }
 0x2b9   : > { %v1523_v39 = vpack.c.bf16 %v1521_v54, %v1519_v35 }
 0x2ba   : > { %v1524_v43 = vpack.c.bf16 %v1522_v60, %v1520_v56 }
 0x2bb   : > { %3481 = dma.done.wait [#allocation5], 12288 }
 0x2bc   : > { %3482 = vsyncadd [#allocation5], 4294955008  ;;  %1643 = vmatprep.subr.bf16.mxu0 %v1524_v43  ;;  %v4263_v47 = vmov 0   ;;  %vm1636_vm3 = vcmask 130048   ;;  %v3374_v37 = vld [vmem:[%s4207_s4] sm:$0xff]   ;;  %v1530_v38 = vld [vmem:[#allocation2 + $0x8] sm:$0xff] }
 0x2bd   : > { %1675 = vmatprep.mubr.bf16.mxu0 %v4263_v47  ;;  %1644 = vmatpush1.bf16.msra.mxu0 %v1523_v39  ;;  %v1529_v44 = vld [vmem:[#allocation2] sm:$0xff]  ;;  %v1532_v36 = vld [vmem:[#allocation2 + $0x18] sm:$0xff]  ;;  %v1531_v35 = vld [vmem:[#allocation2 + $0x10] sm:$0xff] }
 0x2be   : > { %1712 = vmatprep.subr.bf16.mxu0 %v1530_v38  ;;  %v1534_v43 = vld [vmem:[#allocation2 + $0x28] sm:$0xff]  ;;  %v1533_v46 = vld [vmem:[#allocation2 + $0x20] sm:$0xff]  ;;  %v1536_v48 = vld [vmem:[#allocation2 + $0x38] sm:$0xff] }
 0x2bf   : > { %v3375_v45 = vld [vmem:[%s4207_s4 + $0x8] ss:$0 sps:$4 sm:$0xff]   ;;  %v1535_v59 = vld [vmem:[#allocation2 + $0x30] sm:$0xff]  ;;  %v1537_v50 = vld [vmem:[#allocation2 + $0x40] sm:$0xff] }
 0x2c0   : > { %2972 = vmatmul.mubr.msk.bf16.vlgmr.msra.gmra.mrb[20].mxu0 %vm1636_vm3, %v3374_v37  ;;  %v1538_v58 = vld [vmem:[#allocation2 + $0x48] sm:$0xff]  ;;  %v1540_v62 = vld [vmem:[#allocation2 + $0x58] sm:$0xff]  ;;  %v1539_v63 = vld [vmem:[#allocation2 + $0x50] sm:$0xff] }
 0x2c1   : > { %1685 = vmatprep.mubr.bf16.mxu0 %v4263_v47  ;;  %1713 = vmatpush1.bf16.msra.mxu0 %v1529_v44  ;;  %v1542_v51 = vld [vmem:[#allocation2 + $0x68] sm:$0xff]  ;;  %v1541_v57 = vld [vmem:[#allocation2 + $0x60] sm:$0xff]  ;;  %v1544_v55 = vld [vmem:[#allocation2 + $0x78] sm:$0xff] }
 0x2c2   : > { %1714 = vmatprep.subr.bf16.mxu0 %v1532_v36  ;;  %v1543_v53 = vld [vmem:[#allocation2 + $0x70] sm:$0xff]  ;;  %v1546_v61 = vld [vmem:[#allocation2 + $0x88] sm:$0xff]  ;;  %v1545_v54 = vld [vmem:[#allocation2 + $0x80] sm:$0xff] }
 0x2c3   : > { %v1548_v56 = vld [vmem:[#allocation2 + $0x98] sm:$0xff]  ;;  %v1547_v60 = vld [vmem:[#allocation2 + $0x90] sm:$0xff]  ;;  %v1550_v39 = vld [vmem:[#allocation2 + $0xa8] sm:$0xff] }
 0x2c4   : > { %v1549_v37 = vld [vmem:[#allocation2 + $0xa0] sm:$0xff]  ;;  %v1552_v38 = vld [vmem:[#allocation2 + $0xb8] sm:$0xff]  ;;  %v1551_v44 = vld [vmem:[#allocation2 + $0xb0] sm:$0xff] }
 0x2c5   : > { %1715 = vmatpush1.bf16.msra.mxu0 %v1531_v35  ;;  %v1554_v36 = vld [vmem:[#allocation2 + $0xc8] sm:$0xff]  ;;  %v1553_v35 = vld [vmem:[#allocation2 + $0xc0] sm:$0xff] }
 0x2c6   : > { %1716 = vmatprep.subr.bf16.mxu0 %v1534_v43  ;;  %v1556_v43 = vld [vmem:[#allocation2 + $0xd8] sm:$0xff] }
 0x2c8   : > { %2973 = vmatmul.mubr.msk.bf16.gmra.mrb[24].mxu0 %vm1636_vm3, %v3375_v45  ;;  %v1555_v45 = vld [vmem:[#allocation2 + $0xd0] sm:$0xff] }
 0x2c9   : > { %1717 = vmatpush1.bf16.msra.mxu0 %v1533_v46  ;;  %v1558_v46 = vld [vmem:[#allocation2 + $0xe8] sm:$0xff] }
 0x2ca   : > { %1718 = vmatprep.subr.bf16.mxu0 %v1536_v48  ;;  %v1557_v48 = vld [vmem:[#allocation2 + $0xe0] sm:$0xff] }
 0x2cd   : > { %1719 = vmatpush1.bf16.msra.mxu0 %v1535_v59  ;;  %v1560_v59 = vld [vmem:[#allocation2 + $0xf8] sm:$0xff] }
 0x2ce   : > { %1720 = vmatprep.subr.bf16.mxu0 %v1538_v58  ;;  %v1559_v58 = vld [vmem:[#allocation2 + $0xf0] sm:$0xff] }
 0x2d1   : > { %1721 = vmatpush1.bf16.msra.mxu0 %v1537_v50  ;;  %v1562_v50 = vld [vmem:[#allocation2 + $0x108] sm:$0xff] }
 0x2d2   : > { %1722 = vmatprep.subr.bf16.mxu0 %v1540_v62 }
 0x2d5   : > { %1723 = vmatpush1.bf16.msra.mxu0 %v1539_v63 }
 0x2d6   : > { %1724 = vmatprep.subr.bf16.mxu0 %v1542_v51 }
 0x2d9   : > { %1725 = vmatpush1.bf16.msra.mxu0 %v1541_v57 }
 0x2da   : > { %1726 = vmatprep.subr.bf16.mxu0 %v1544_v55 }
 0x2dd   : > { %1727 = vmatpush1.bf16.msra.mxu0 %v1543_v53 }
 0x2de   : > { %1728 = vmatprep.subr.bf16.mxu0 %v1546_v61  ;;  %v1561_v61 = vld [vmem:[#allocation2 + $0x100] sm:$0xff] }
 0x2e1   : > { %1729 = vmatpush1.bf16.msra.mxu0 %v1545_v54 }
 0x2e2   : > { %1730 = vmatprep.subr.bf16.mxu0 %v1548_v56  ;;  %v1564_v56 = vld [vmem:[#allocation2 + $0x118] sm:$0xff] }
 0x2e5   : > { %1731 = vmatpush1.bf16.msra.mxu0 %v1547_v60  ;;  %v1563_v60 = vld [vmem:[#allocation2 + $0x110] sm:$0xff] }
 0x2e6   : > { %1732 = vmatprep.subr.bf16.mxu0 %v1550_v39  ;;  %v1566_v39 = vld [vmem:[#allocation2 + $0x128] sm:$0xff] }
 0x2e9   : > { %1733 = vmatpush1.bf16.msra.mxu0 %v1549_v37 }
 0x2ea   : > { %1734 = vmatprep.subr.bf16.mxu0 %v1552_v38 }
 0x2ed   : > { %1735 = vmatpush1.bf16.msra.mxu0 %v1551_v44 }
 0x2ee   : > { %1736 = vmatprep.subr.bf16.mxu0 %v1554_v36  ;;  %v1565_v36 = vld [vmem:[#allocation2 + $0x120] sm:$0xff] }
 0x2f1   : > { %1737 = vmatpush1.bf16.msra.mxu0 %v1553_v35 }
 0x2f2   : > { %1738 = vmatprep.subr.bf16.mxu0 %v1556_v43  ;;  %v1568_v43 = vld [vmem:[#allocation2 + $0x138] sm:$0xff] }
 0x2f5   : > { %1739 = vmatpush1.bf16.msra.mxu0 %v1555_v45  ;;  %v1567_v45 = vld [vmem:[#allocation2 + $0x130] sm:$0xff] }
 0x2f6   : > { %1740 = vmatprep.subr.bf16.mxu0 %v1558_v46  ;;  %v1570_v46 = vld [vmem:[#allocation2 + $0x148] sm:$0xff] }
 0x2f9   : > { %1741 = vmatpush1.bf16.msra.mxu0 %v1557_v48  ;;  %v1569_v48 = vld [vmem:[#allocation2 + $0x140] sm:$0xff] }
 0x2fa   : > { %1742 = vmatprep.subr.bf16.mxu0 %v1560_v59  ;;  %v1572_v59 = vld [vmem:[#allocation2 + $0x158] sm:$0xff] }
 0x2fd   : > { %1743 = vmatpush1.bf16.msra.mxu0 %v1559_v58  ;;  %v1571_v58 = vld [vmem:[#allocation2 + $0x150] sm:$0xff] }
 0x2fe   : > { %1753 = vmatprep.subr.bf16.mxu0 %v1562_v50  ;;  %v1574_v50 = vld [vmem:[#allocation2 + $0x168] sm:$0xff] }
 0x393   : > { %v1677_v62 = vpop.f32.mrb[20].mxu0 }
 0x394   : > { %v1679_v63 = vpop.f32.mrb[21].mxu0  ;;  %v1694_v55 = vpack.c.bf16 %v1677_v62, %v1677_v62  ;;  %v1573_v62 = vld [vmem:[#allocation2 + $0x160] sm:$0xff] }
 0x395   : > { %v1695_v51 = vpack.c.bf16 %v1679_v63, %v1679_v63  ;;  %v4022_v57 = vpop.f32.mrb[22].mxu0  ;;  %v1576_v63 = vld [vmem:[#allocation2 + $0x178] sm:$0xff] }
 0x396   : > { %v1683_v53 = vpop.f32.mrb[23].mxu0 }
 0x397   : > { %v1697_v54 = vpack.c.bf16 %v1683_v53, %v1683_v53  ;;  %1744 = vmatprep.mubr.bf16.mxu0 %v1695_v51  ;;  %v1575_v51 = vld [vmem:[#allocation2 + $0x170] sm:$0xff]  ;;  %v1577_v53 = vld [vmem:[#allocation2 + $0x180] sm:$0xff] }
 0x398   : > { %1745 = vmatmul.mubr.bf16.vlgmr.msra.gmra.mrb[28].mxu0 %v1694_v55  ;;  %v1578_v55 = vld [vmem:[#allocation2 + $0x188] sm:$0xff] }
 0x399   : > { %1754 = vmatpush1.bf16.msra.mxu0 %v1561_v61  ;;  %1785 = vmatprep.mubr.bf16.mxu0 %v1697_v54  ;;  %v1580_v61 = vld [vmem:[#allocation2 + $0x198] sm:$0xff]  ;;  %v1579_v54 = vld [vmem:[#allocation2 + $0x190] sm:$0xff] }
 0x39a   : > { %1755 = vmatprep.subr.bf16.mxu0 %v1564_v56  ;;  %v1582_v56 = vld [vmem:[#allocation2 + $0x1a8] sm:$0xff] }
 0x39b   : > { %v4024_v37 = vpop.f32.mrb[24].mxu0 }
 0x39c   : > { %v4026_v38 = vpop.f32.mrb[25].mxu0 }
 0x39d   : > { %1756 = vmatpush1.bf16.msra.mxu0 %v1563_v60  ;;  %v1691_v44 = vpop.f32.mrb[26].mxu0  ;;  %v1581_v60 = vld [vmem:[#allocation2 + $0x1a0] sm:$0xff] }
 0x39e   : > { %1757 = vmatprep.subr.bf16.mxu0 %v1566_v39  ;;  %v1692_v35 = vpop.f32.mrb[27].mxu0  ;;  %v1584_v39 = vld [vmem:[#allocation2 + $0x1b8] sm:$0xff]  ;;  %v1583_v44 = vld [vmem:[#allocation2 + $0x1b0] sm:$0xff] }
 0x39f   : > { %v1585_v35 = vld [vmem:[#allocation2 + $0x1c0] sm:$0xff] }
 0x3a1   : > { %1758 = vmatpush1.bf16.msra.mxu0 %v1565_v36  ;;  %v1586_v36 = vld [vmem:[#allocation2 + $0x1c8] sm:$0xff] }
 0x3a2   : > { %1759 = vmatprep.subr.bf16.mxu0 %v1568_v43  ;;  %v1588_v43 = vld [vmem:[#allocation2 + $0x1d8] sm:$0xff] }
 0x3a5   : > { %1760 = vmatpush1.bf16.msra.mxu0 %v1567_v45  ;;  %v1587_v45 = vld [vmem:[#allocation2 + $0x1d0] sm:$0xff] }
 0x3a6   : > { %1761 = vmatprep.subr.bf16.mxu0 %v1570_v46  ;;  %v1590_v46 = vld [vmem:[#allocation2 + $0x1e8] sm:$0xff] }
 0x3a9   : > { %1762 = vmatpush1.bf16.msra.mxu0 %v1569_v48  ;;  %v1589_v48 = vld [vmem:[#allocation2 + $0x1e0] sm:$0xff] }
 0x3aa   : > { %1763 = vmatprep.subr.bf16.mxu0 %v1572_v59  ;;  %v1592_v59 = vld [vmem:[#allocation2 + $0x1f8] sm:$0xff] }
 0x3ad   : > { %1764 = vmatpush1.bf16.msra.mxu0 %v1571_v58  ;;  %v1591_v58 = vld [vmem:[#allocation2 + $0x1f0] sm:$0xff] }
 0x3ae   : > { %1765 = vmatprep.subr.bf16.mxu0 %v1574_v50  ;;  %v1594_v50 = vld [vmem:[#allocation2 + $0x208] sm:$0xff] }
 0x3b1   : > { %1766 = vmatpush1.bf16.msra.mxu0 %v1573_v62  ;;  %v1699_v62 = vpack.c.bf16 %v4026_v38, %v4026_v38  ;;  %v1602_v38 = vld [vmem:[#allocation2 + $0x248] sm:$0xff] }
 0x3b2   : > { %1767 = vmatprep.subr.bf16.mxu0 %v1576_v63  ;;  %v1696_v63 = vpack.c.bf16 %v4022_v57, %v4022_v57  ;;  %v1601_v57 = vld [vmem:[#allocation2 + $0x240] sm:$0xff] }
 0x3b5   : > { %1768 = vmatpush1.bf16.msra.mxu0 %v1575_v51  ;;  %v1593_v51 = vld [vmem:[#allocation2 + $0x200] sm:$0xff] }
 0x3b6   : > { %1769 = vmatprep.subr.bf16.mxu0 %v1578_v55  ;;  %v1596_v55 = vld [vmem:[#allocation2 + $0x218] sm:$0xff] }
 0x3b9   : > { %1770 = vmatpush1.bf16.msra.mxu0 %v1577_v53  ;;  %v1595_v53 = vld [vmem:[#allocation2 + $0x210] sm:$0xff] }
 0x3ba   : > { %1771 = vmatprep.subr.bf16.mxu0 %v1580_v61  ;;  %v1598_v61 = vld [vmem:[#allocation2 + $0x228] sm:$0xff] }
 0x3bd   : > { %1772 = vmatpush1.bf16.msra.mxu0 %v1579_v54  ;;  %v1597_v54 = vld [vmem:[#allocation2 + $0x220] sm:$0xff] }
 0x3be   : > { %1773 = vmatprep.subr.bf16.mxu0 %v1582_v56  ;;  %v1600_v56 = vld [vmem:[#allocation2 + $0x238] sm:$0xff] }
 0x3c1   : > { %1774 = vmatpush1.bf16.msra.mxu0 %v1581_v60  ;;  %v1599_v60 = vld [vmem:[#allocation2 + $0x230] sm:$0xff] }
 0x3c2   : > { %1775 = vmatprep.subr.bf16.mxu0 %v1584_v39  ;;  %v1604_v39 = vld [vmem:[#allocation2 + $0x258] sm:$0xff] }
 0x3c5   : > { %1776 = vmatpush1.bf16.msra.mxu0 %v1583_v44  ;;  %v1603_v44 = vld [vmem:[#allocation2 + $0x250] sm:$0xff] }
 0x3c6   : > { %1777 = vmatprep.subr.bf16.mxu0 %v1586_v36  ;;  %v1606_v36 = vld [vmem:[#allocation2 + $0x268] sm:$0xff] }
 0x3c9   : > { %1778 = vmatpush1.bf16.msra.mxu0 %v1585_v35  ;;  %v1605_v35 = vld [vmem:[#allocation2 + $0x260] sm:$0xff] }
 0x3ca   : > { %1779 = vmatprep.subr.bf16.mxu0 %v1588_v43  ;;  %v1608_v43 = vld [vmem:[#allocation2 + $0x278] sm:$0xff] }
 0x3cd   : > { %1780 = vmatpush1.bf16.msra.mxu0 %v1587_v45  ;;  %v1607_v45 = vld [vmem:[#allocation2 + $0x270] sm:$0xff] }
 0x3ce   : > { %1781 = vmatprep.subr.bf16.mxu0 %v1590_v46  ;;  %v1610_v46 = vld [vmem:[#allocation2 + $0x288] sm:$0xff] }
 0x3d1   : > { %1782 = vmatpush1.bf16.msra.mxu0 %v1589_v48  ;;  %v1609_v48 = vld [vmem:[#allocation2 + $0x280] sm:$0xff] }
 0x3d2   : > { %1783 = vmatprep.subr.bf16.mxu0 %v1592_v59  ;;  %v1612_v59 = vld [vmem:[#allocation2 + $0x298] sm:$0xff] }
 0x3d5   : > { %1784 = vmatpush1.bf16.msra.mxu0 %v1591_v58  ;;  %v1611_v58 = vld [vmem:[#allocation2 + $0x290] sm:$0xff] }
 0x3d6   : > { %1794 = vmatprep.subr.bf16.mxu0 %v1594_v50  ;;  %v1614_v50 = vld [vmem:[#allocation2 + $0x2a8] sm:$0xff] }
 0x3d8   : > { %1786 = vmatmul.mubr.bf16.vlgmr.msra.gmra.mrb[28].mxu0 %v1696_v63  ;;  %v1616_v63 = vld [vmem:[#allocation2 + $0x2b8] sm:$0xff] }
 0x3d9   : > { %1795 = vmatpush1.bf16.msra.mxu0 %v1593_v51  ;;  %1826 = vmatprep.mubr.bf16.mxu0 %v1699_v62  ;;  %v1613_v62 = vld [vmem:[#allocation2 + $0x2a0] sm:$0xff]  ;;  %v1615_v51 = vld [vmem:[#allocation2 + $0x2b0] sm:$0xff] }
 0x3da   : > { %1796 = vmatprep.subr.bf16.mxu0 %v1596_v55  ;;  %v1618_v55 = vld [vmem:[#allocation2 + $0x2c8] sm:$0xff] }
 0x3dd   : > { %1797 = vmatpush1.bf16.msra.mxu0 %v1595_v53  ;;  %v1617_v53 = vld [vmem:[#allocation2 + $0x2c0] sm:$0xff] }
 0x3de   : > { %1798 = vmatprep.subr.bf16.mxu0 %v1598_v61  ;;  %v1620_v61 = vld [vmem:[#allocation2 + $0x2d8] sm:$0xff] }
 0x3e1   : > { %1799 = vmatpush1.bf16.msra.mxu0 %v1597_v54  ;;  %v1619_v54 = vld [vmem:[#allocation2 + $0x2d0] sm:$0xff] }
 0x3e2   : > { %1800 = vmatprep.subr.bf16.mxu0 %v1600_v56  ;;  %v1622_v56 = vld [vmem:[#allocation2 + $0x2e8] sm:$0xff] }
 0x3e5   : > { %1801 = vmatpush1.bf16.msra.mxu0 %v1599_v60  ;;  %v1621_v60 = vld [vmem:[#allocation2 + $0x2e0] sm:$0xff] }
 0x3e6   : > { %1802 = vmatprep.subr.bf16.mxu0 %v1602_v38  ;;  %v1624_v38 = vld [vmem:[#allocation2 + $0x2f8] sm:$0xff] }
 0x3e9   : > { %1803 = vmatpush1.bf16.msra.mxu0 %v1601_v57  ;;  %v1623_v57 = vld [vmem:[#allocation2 + $0x2f0] sm:$0xff] }
 0x3ea   : > { %1804 = vmatprep.subr.bf16.mxu0 %v1604_v39  ;;  %v1698_v39 = vpack.c.bf16 %v4024_v37, %v4024_v37 }
 0x3ed   : > { %1805 = vmatpush1.bf16.msra.mxu0 %v1603_v44  ;;  %v1700_v44 = vld [vmem:[%s4208_s5] sm:$0x3] }
 0x3ee   : > { %1806 = vmatprep.subr.bf16.mxu0 %v1606_v36  ;;  %v1705_v36 = vrot.slane %v1700_v44, %v4003_v49 }
 0x3f1   : > { %1807 = vmatpush1.bf16.msra.mxu0 %v1605_v35  ;;  %v1709_v35 = vrot.slane %v1700_v44, %v4008_v52 }
 0x3f2   : > { %1808 = vmatprep.subr.bf16.mxu0 %v1608_v43 }
 0x3f5   : > { %1809 = vmatpush1.bf16.msra.mxu0 %v1607_v45 }
 0x3f6   : > { %1810 = vmatprep.subr.bf16.mxu0 %v1610_v46 }
 0x3f9   : > { %1811 = vmatpush1.bf16.msra.mxu0 %v1609_v48 }
 0x3fa   : > { %1812 = vmatprep.subr.bf16.mxu0 %v1612_v59 }
 0x3fd   : > { %1813 = vmatpush1.bf16.msra.mxu0 %v1611_v58 }
 0x3fe   : > { %1814 = vmatprep.subr.bf16.mxu0 %v1614_v50 }
 0x401   : > { %1815 = vmatpush1.bf16.msra.mxu0 %v1613_v62 }
 0x402   : > { %1816 = vmatprep.subr.bf16.mxu0 %v1616_v63 }
 0x405   : > { %1817 = vmatpush1.bf16.msra.mxu0 %v1615_v51 }
 0x406   : > { %1818 = vmatprep.subr.bf16.mxu0 %v1618_v55 }
 0x409   : > { %1819 = vmatpush1.bf16.msra.mxu0 %v1617_v53 }
 0x40a   : > { %1820 = vmatprep.subr.bf16.mxu0 %v1620_v61 }
 0x40d   : > { %1821 = vmatpush1.bf16.msra.mxu0 %v1619_v54 }
 0x40e   : > { %1822 = vmatprep.subr.bf16.mxu0 %v1622_v56 }
 0x411   : > { %1823 = vmatpush1.bf16.msra.mxu0 %v1621_v60 }
 0x412   : > { %1824 = vmatprep.subr.bf16.mxu0 %v1624_v38 }
 0x415   : > { %1825 = vmatpush1.bf16.msra.mxu0 %v1623_v57 }
 0x418   : > { %1827 = vmatmul.mubr.bf16.vlgmr.msra.gmra.mrb[28].mxu0 %v1698_v39 }
 0x4eb   : > { %v1828_v43 = vpop.f32.mrb[28].mxu0 }
 0x4ec   : > { %v3164_v45 = vadd.f32 %v1828_v43, %v1705_v36  ;;  %v1830_v46 = vpop.f32.mrb[29].mxu0 }
 0x4ed   : > { %v3165_v48 = vadd.f32 %v1830_v46, %v1709_v35  ;;  %v1832_v59 = vpop.f32.mrb[30].mxu0 }
 0x4ee   : > { %v1835_v58 = vmul.f32 0.5, %v3164_v45  ;;  %v1833_v50 = vpop.f32.mrb[31].mxu0 }
 0x4ef   : > { %v1836_v62 = vmul.f32 0.5, %v3165_v48 }
 0x4f0   : > { %3376 = vtanh.f32 %v1835_v58 }
 0x4f1   : > { %3378 = vtanh.f32 %v1836_v62 }
 0x4fa   : > { %v3377_v37 = vpop.eup %3376 }
 0x4fb   : > { %v3379_v63 = vpop.eup %3378  ;;  %v1839_v51 = vmul.f32 0.5, %v3377_v37 }
 0x4fc   : > { %v1840_v55 = vmul.f32 0.5, %v3379_v63 }
 0x4fd   : > { %v1841_v53 = vadd.f32 0.5, %v1839_v51 }
 0x4fe   : > { %v1842_v61 = vadd.f32 0.5, %v1840_v55 }
 0x4ff   : > { %v1843_v54 = vmul.f32 %v3164_v45, %v1841_v53 }
 0x500   : > { %v1844_v56 = vmul.f32 %v3165_v48, %v1842_v61 }
 0x501   : > { %v1845_v60 = vpack.c.bf16 %v1843_v54, %v1843_v54 }
 0x502   : > { %v1846_v38 = vpack.c.bf16 %v1844_v56, %v1844_v56 }
 0x503   : > { %3483 = dma.done.wait [#allocation5 + $0x1], 12288 }
 0x504   : > { %3484 = vsyncadd [#allocation5 + $0x1], 4294955008  ;;  %vm1963_vm4 = vcmask 1043456   ;;  %2002 = vmatprep.mubr.bf16.mxu1 %v4263_v47  ;;  %vm1956_vm5 = vcmask 64512   ;;  %v3380_v39 = vld [vmem:[%s4209_s6] sm:$0xff]   ;;  %v1850_v44 = vld [vmem:[#allocation3 + $0x8] sm:$0xff] }
 0x505   : > { %2976 = vmatprep.subr.msk.bf16.mxu1 %vm1963_vm4, %v1846_v38  ;;  %v1965_v57 = vsel %vm1963_vm4, %v1845_v60, 0  ;;  %v1849_v36 = vld [vmem:[#allocation3] sm:$0xff]  ;;  %v1852_v35 = vld [vmem:[#allocation3 + $0x18] sm:$0xff]  ;;  %v1851_v43 = vld [vmem:[#allocation3 + $0x10] sm:$0xff] }
 0x506   : > { %1971 = vmatpush1.bf16.msra.mxu1 %v1965_v57  ;;  %v1854_v45 = vld [vmem:[#allocation3 + $0x28] sm:$0xff]  ;;  %v1853_v48 = vld [vmem:[#allocation3 + $0x20] sm:$0xff]  ;;  %v1856_v59 = vld [vmem:[#allocation3 + $0x38] sm:$0xff] }
 0x507   : > { %2039 = vmatprep.subr.bf16.mxu1 %v1850_v44  ;;  %v3381_v46 = vld [vmem:[%s4209_s6 + $0x8] ss:$0 sps:$4 sm:$0xff]   ;;  %v1855_v58 = vld [vmem:[#allocation3 + $0x30] sm:$0xff]  ;;  %v1857_v62 = vld [vmem:[#allocation3 + $0x40] sm:$0xff] }
 0x508   : > { %v1858_v50 = vld [vmem:[#allocation3 + $0x48] sm:$0xff]  ;;  %v1860_v37 = vld [vmem:[#allocation3 + $0x58] sm:$0xff]  ;;  %v1859_v63 = vld [vmem:[#allocation3 + $0x50] sm:$0xff] }
 0x509   : > { %2977 = vmatmul.mubr.msk.bf16.vlgmr.msra.gmra.mrb[4].mxu1 %vm1956_vm5, %v3380_v39  ;;  %v1862_v51 = vld [vmem:[#allocation3 + $0x68] sm:$0xff]  ;;  %v1861_v55 = vld [vmem:[#allocation3 + $0x60] sm:$0xff]  ;;  %v1864_v53 = vld [vmem:[#allocation3 + $0x78] sm:$0xff] }
 0x50a   : > { %2012 = vmatprep.mubr.bf16.mxu1 %v4263_v47  ;;  %2040 = vmatpush1.bf16.msra.mxu1 %v1849_v36  ;;  %v1863_v61 = vld [vmem:[#allocation3 + $0x70] sm:$0xff]  ;;  %v1866_v54 = vld [vmem:[#allocation3 + $0x88] sm:$0xff]  ;;  %v1865_v56 = vld [vmem:[#allocation3 + $0x80] sm:$0xff] }
 0x50b   : > { %2041 = vmatprep.subr.bf16.mxu1 %v1852_v35  ;;  %v1868_v60 = vld [vmem:[#allocation3 + $0x98] sm:$0xff]  ;;  %v1867_v38 = vld [vmem:[#allocation3 + $0x90] sm:$0xff]  ;;  %v1870_v57 = vld [vmem:[#allocation3 + $0xa8] sm:$0xff] }
 0x50c   : > { %v1869_v39 = vld [vmem:[#allocation3 + $0xa0] sm:$0xff]  ;;  %v1872_v44 = vld [vmem:[#allocation3 + $0xb8] sm:$0xff]  ;;  %v1871_v36 = vld [vmem:[#allocation3 + $0xb0] sm:$0xff] }
 0x50d   : > { %v1874_v35 = vld [vmem:[#allocation3 + $0xc8] sm:$0xff] }
 0x50e   : > { %2042 = vmatpush1.bf16.msra.mxu1 %v1851_v43  ;;  %v1873_v43 = vld [vmem:[#allocation3 + $0xc0] sm:$0xff] }
 0x50f   : > { %2043 = vmatprep.subr.bf16.mxu1 %v1854_v45  ;;  %v1876_v45 = vld [vmem:[#allocation3 + $0xd8] sm:$0xff] }
 0x511   : > { %2978 = vmatmul.mubr.msk.bf16.gmra.mrb[8].mxu1 %vm1956_vm5, %v3381_v46  ;;  %v1875_v46 = vld [vmem:[#allocation3 + $0xd0] sm:$0xff] }
 0x512   : > { %2044 = vmatpush1.bf16.msra.mxu1 %v1853_v48  ;;  %v1878_v48 = vld [vmem:[#allocation3 + $0xe8] sm:$0xff] }
 0x513   : > { %2045 = vmatprep.subr.bf16.mxu1 %v1856_v59  ;;  %v1877_v59 = vld [vmem:[#allocation3 + $0xe0] sm:$0xff] }
 0x516   : > { %2046 = vmatpush1.bf16.msra.mxu1 %v1855_v58  ;;  %v1880_v58 = vld [vmem:[#allocation3 + $0xf8] sm:$0xff] }
 0x517   : > { %2047 = vmatprep.subr.bf16.mxu1 %v1858_v50  ;;  %v1879_v50 = vld [vmem:[#allocation3 + $0xf0] sm:$0xff] }
 0x51a   : > { %2048 = vmatpush1.bf16.msra.mxu1 %v1857_v62  ;;  %v1882_v62 = vld [vmem:[#allocation3 + $0x108] sm:$0xff] }
 0x51b   : > { %2049 = vmatprep.subr.bf16.mxu1 %v1860_v37 }
 0x51e   : > { %2050 = vmatpush1.bf16.msra.mxu1 %v1859_v63 }
 0x51f   : > { %2051 = vmatprep.subr.bf16.mxu1 %v1862_v51 }
 0x522   : > { %2052 = vmatpush1.bf16.msra.mxu1 %v1861_v55 }
 0x523   : > { %2053 = vmatprep.subr.bf16.mxu1 %v1864_v53 }
 0x526   : > { %2054 = vmatpush1.bf16.msra.mxu1 %v1863_v61 }
 0x527   : > { %2055 = vmatprep.subr.bf16.mxu1 %v1866_v54  ;;  %v1881_v54 = vld [vmem:[#allocation3 + $0x100] sm:$0xff] }
 0x52a   : > { %2056 = vmatpush1.bf16.msra.mxu1 %v1865_v56 }
 0x52b   : > { %2057 = vmatprep.subr.bf16.mxu1 %v1868_v60  ;;  %v1884_v60 = vld [vmem:[#allocation3 + $0x118] sm:$0xff] }
 0x52e   : > { %2058 = vmatpush1.bf16.msra.mxu1 %v1867_v38  ;;  %v1883_v38 = vld [vmem:[#allocation3 + $0x110] sm:$0xff] }
 0x52f   : > { %2059 = vmatprep.subr.bf16.mxu1 %v1870_v57  ;;  %v1886_v57 = vld [vmem:[#allocation3 + $0x128] sm:$0xff] }
 0x532   : > { %2060 = vmatpush1.bf16.msra.mxu1 %v1869_v39 }
 0x533   : > { %2061 = vmatprep.subr.bf16.mxu1 %v1872_v44 }
 0x536   : > { %2062 = vmatpush1.bf16.msra.mxu1 %v1871_v36 }
 0x537   : > { %2063 = vmatprep.subr.bf16.mxu1 %v1874_v35  ;;  %v1885_v35 = vld [vmem:[#allocation3 + $0x120] sm:$0xff] }
 0x53a   : > { %2064 = vmatpush1.bf16.msra.mxu1 %v1873_v43 }
 0x53b   : > { %2065 = vmatprep.subr.bf16.mxu1 %v1876_v45  ;;  %v1888_v45 = vld [vmem:[#allocation3 + $0x138] sm:$0xff] }
 0x53e   : > { %2066 = vmatpush1.bf16.msra.mxu1 %v1875_v46  ;;  %v1887_v46 = vld [vmem:[#allocation3 + $0x130] sm:$0xff] }
 0x53f   : > { %2067 = vmatprep.subr.bf16.mxu1 %v1878_v48  ;;  %v1890_v48 = vld [vmem:[#allocation3 + $0x148] sm:$0xff] }
 0x542   : > { %2068 = vmatpush1.bf16.msra.mxu1 %v1877_v59  ;;  %v1889_v59 = vld [vmem:[#allocation3 + $0x140] sm:$0xff] }
 0x543   : > { %2069 = vmatprep.subr.bf16.mxu1 %v1880_v58  ;;  %v1892_v58 = vld [vmem:[#allocation3 + $0x158] sm:$0xff] }
 0x546   : > { %2070 = vmatpush1.bf16.msra.mxu1 %v1879_v50  ;;  %v1891_v50 = vld [vmem:[#allocation3 + $0x150] sm:$0xff] }
 0x547   : > { %2080 = vmatprep.subr.bf16.mxu1 %v1882_v62  ;;  %v1894_v62 = vld [vmem:[#allocation3 + $0x168] sm:$0xff] }
 0x5dc   : > { %v2004_v37 = vpop.f32.mrb[4].mxu1 }
 0x5dd   : > { %v2006_v63 = vpop.f32.mrb[5].mxu1  ;;  %v2021_v53 = vpack.c.bf16 %v2004_v37, %v2004_v37  ;;  %v1893_v37 = vld [vmem:[#allocation3 + $0x160] sm:$0xff] }
 0x5de   : > { %v2022_v51 = vpack.c.bf16 %v2006_v63, %v2006_v63  ;;  %v4051_v55 = vpop.f32.mrb[6].mxu1  ;;  %v1896_v63 = vld [vmem:[#allocation3 + $0x178] sm:$0xff] }
 0x5df   : > { %v2010_v61 = vpop.f32.mrb[7].mxu1 }
 0x5e0   : > { %v2024_v56 = vpack.c.bf16 %v2010_v61, %v2010_v61  ;;  %2071 = vmatprep.mubr.bf16.mxu1 %v2022_v51  ;;  %v1895_v51 = vld [vmem:[#allocation3 + $0x170] sm:$0xff]  ;;  %v1897_v61 = vld [vmem:[#allocation3 + $0x180] sm:$0xff] }
 0x5e1   : > { %2072 = vmatmul.mubr.bf16.vlgmr.msra.gmra.mrb[12].mxu1 %v2021_v53  ;;  %v1898_v53 = vld [vmem:[#allocation3 + $0x188] sm:$0xff] }
 0x5e2   : > { %2081 = vmatpush1.bf16.msra.mxu1 %v1881_v54  ;;  %2112 = vmatprep.mubr.bf16.mxu1 %v2024_v56  ;;  %v1900_v54 = vld [vmem:[#allocation3 + $0x198] sm:$0xff]  ;;  %v1899_v56 = vld [vmem:[#allocation3 + $0x190] sm:$0xff] }
 0x5e3   : > { %2082 = vmatprep.subr.bf16.mxu1 %v1884_v60  ;;  %v1902_v60 = vld [vmem:[#allocation3 + $0x1a8] sm:$0xff] }
 0x5e4   : > { %v4053_v39 = vpop.f32.mrb[8].mxu1 }
 0x5e5   : > { %v4055_v44 = vpop.f32.mrb[9].mxu1 }
 0x5e6   : > { %2083 = vmatpush1.bf16.msra.mxu1 %v1883_v38  ;;  %v2018_v36 = vpop.f32.mrb[10].mxu1  ;;  %v1901_v38 = vld [vmem:[#allocation3 + $0x1a0] sm:$0xff] }
 0x5e7   : > { %2084 = vmatprep.subr.bf16.mxu1 %v1886_v57  ;;  %v2019_v43 = vpop.f32.mrb[11].mxu1  ;;  %v1904_v57 = vld [vmem:[#allocation3 + $0x1b8] sm:$0xff]  ;;  %v1903_v36 = vld [vmem:[#allocation3 + $0x1b0] sm:$0xff] }
 0x5e8   : > { %v1905_v43 = vld [vmem:[#allocation3 + $0x1c0] sm:$0xff] }
 0x5ea   : > { %2085 = vmatpush1.bf16.msra.mxu1 %v1885_v35  ;;  %v1906_v35 = vld [vmem:[#allocation3 + $0x1c8] sm:$0xff] }
 0x5eb   : > { %2086 = vmatprep.subr.bf16.mxu1 %v1888_v45  ;;  %v1908_v45 = vld [vmem:[#allocation3 + $0x1d8] sm:$0xff] }
 0x5ee   : > { %2087 = vmatpush1.bf16.msra.mxu1 %v1887_v46  ;;  %v1907_v46 = vld [vmem:[#allocation3 + $0x1d0] sm:$0xff] }
 0x5ef   : > { %2088 = vmatprep.subr.bf16.mxu1 %v1890_v48  ;;  %v1910_v48 = vld [vmem:[#allocation3 + $0x1e8] sm:$0xff] }
 0x5f2   : > { %2089 = vmatpush1.bf16.msra.mxu1 %v1889_v59  ;;  %v1909_v59 = vld [vmem:[#allocation3 + $0x1e0] sm:$0xff] }
 0x5f3   : > { %2090 = vmatprep.subr.bf16.mxu1 %v1892_v58  ;;  %v1912_v58 = vld [vmem:[#allocation3 + $0x1f8] sm:$0xff] }
 0x5f6   : > { %2091 = vmatpush1.bf16.msra.mxu1 %v1891_v50  ;;  %v1911_v50 = vld [vmem:[#allocation3 + $0x1f0] sm:$0xff] }
 0x5f7   : > { %2092 = vmatprep.subr.bf16.mxu1 %v1894_v62  ;;  %v1914_v62 = vld [vmem:[#allocation3 + $0x208] sm:$0xff] }
 0x5fa   : > { %2093 = vmatpush1.bf16.msra.mxu1 %v1893_v37  ;;  %v2026_v37 = vpack.c.bf16 %v4055_v44, %v4055_v44  ;;  %v1922_v44 = vld [vmem:[#allocation3 + $0x248] sm:$0xff] }
 0x5fb   : > { %2094 = vmatprep.subr.bf16.mxu1 %v1896_v63  ;;  %v2023_v63 = vpack.c.bf16 %v4051_v55, %v4051_v55  ;;  %v1921_v55 = vld [vmem:[#allocation3 + $0x240] sm:$0xff] }
 0x5fe   : > { %2095 = vmatpush1.bf16.msra.mxu1 %v1895_v51  ;;  %v1913_v51 = vld [vmem:[#allocation3 + $0x200] sm:$0xff] }
 0x5ff   : > { %2096 = vmatprep.subr.bf16.mxu1 %v1898_v53  ;;  %v1916_v53 = vld [vmem:[#allocation3 + $0x218] sm:$0xff] }
 0x602   : > { %2097 = vmatpush1.bf16.msra.mxu1 %v1897_v61  ;;  %v1915_v61 = vld [vmem:[#allocation3 + $0x210] sm:$0xff] }
 0x603   : > { %2098 = vmatprep.subr.bf16.mxu1 %v1900_v54  ;;  %v1918_v54 = vld [vmem:[#allocation3 + $0x228] sm:$0xff] }
 0x606   : > { %2099 = vmatpush1.bf16.msra.mxu1 %v1899_v56  ;;  %v1917_v56 = vld [vmem:[#allocation3 + $0x220] sm:$0xff] }
 0x607   : > { %2100 = vmatprep.subr.bf16.mxu1 %v1902_v60  ;;  %v1920_v60 = vld [vmem:[#allocation3 + $0x238] sm:$0xff] }
 0x60a   : > { %2101 = vmatpush1.bf16.msra.mxu1 %v1901_v38  ;;  %v1919_v38 = vld [vmem:[#allocation3 + $0x230] sm:$0xff] }
 0x60b   : > { %2102 = vmatprep.subr.bf16.mxu1 %v1904_v57  ;;  %v1924_v57 = vld [vmem:[#allocation3 + $0x258] sm:$0xff] }
 0x60e   : > { %2103 = vmatpush1.bf16.msra.mxu1 %v1903_v36  ;;  %v1923_v36 = vld [vmem:[#allocation3 + $0x250] sm:$0xff] }
 0x60f   : > { %2104 = vmatprep.subr.bf16.mxu1 %v1906_v35  ;;  %v1926_v35 = vld [vmem:[#allocation3 + $0x268] sm:$0xff] }
 0x612   : > { %2105 = vmatpush1.bf16.msra.mxu1 %v1905_v43  ;;  %v1925_v43 = vld [vmem:[#allocation3 + $0x260] sm:$0xff] }
 0x613   : > { %2106 = vmatprep.subr.bf16.mxu1 %v1908_v45  ;;  %v1928_v45 = vld [vmem:[#allocation3 + $0x278] sm:$0xff] }
 0x616   : > { %2107 = vmatpush1.bf16.msra.mxu1 %v1907_v46  ;;  %v1927_v46 = vld [vmem:[#allocation3 + $0x270] sm:$0xff] }
 0x617   : > { %2108 = vmatprep.subr.bf16.mxu1 %v1910_v48  ;;  %v1930_v48 = vld [vmem:[#allocation3 + $0x288] sm:$0xff] }
 0x61a   : > { %2109 = vmatpush1.bf16.msra.mxu1 %v1909_v59  ;;  %v1929_v59 = vld [vmem:[#allocation3 + $0x280] sm:$0xff] }
 0x61b   : > { %2110 = vmatprep.subr.bf16.mxu1 %v1912_v58  ;;  %v1932_v58 = vld [vmem:[#allocation3 + $0x298] sm:$0xff] }
 0x61e   : > { %2111 = vmatpush1.bf16.msra.mxu1 %v1911_v50  ;;  %v1931_v50 = vld [vmem:[#allocation3 + $0x290] sm:$0xff] }
 0x61f   : > { %2121 = vmatprep.subr.bf16.mxu1 %v1914_v62  ;;  %v1934_v62 = vld [vmem:[#allocation3 + $0x2a8] sm:$0xff] }
 0x621   : > { %2113 = vmatmul.mubr.bf16.vlgmr.msra.gmra.mrb[12].mxu1 %v2023_v63  ;;  %v1936_v63 = vld [vmem:[#allocation3 + $0x2b8] sm:$0xff] }
 0x622   : > { %2122 = vmatpush1.bf16.msra.mxu1 %v1913_v51  ;;  %2153 = vmatprep.mubr.bf16.mxu1 %v2026_v37  ;;  %v1933_v37 = vld [vmem:[#allocation3 + $0x2a0] sm:$0xff]  ;;  %v1935_v51 = vld [vmem:[#allocation3 + $0x2b0] sm:$0xff] }
 0x623   : > { %2123 = vmatprep.subr.bf16.mxu1 %v1916_v53  ;;  %v1938_v53 = vld [vmem:[#allocation3 + $0x2c8] sm:$0xff] }
 0x626   : > { %2124 = vmatpush1.bf16.msra.mxu1 %v1915_v61  ;;  %v1937_v61 = vld [vmem:[#allocation3 + $0x2c0] sm:$0xff] }
 0x627   : > { %2125 = vmatprep.subr.bf16.mxu1 %v1918_v54  ;;  %v1940_v54 = vld [vmem:[#allocation3 + $0x2d8] sm:$0xff] }
 0x62a   : > { %2126 = vmatpush1.bf16.msra.mxu1 %v1917_v56  ;;  %v1939_v56 = vld [vmem:[#allocation3 + $0x2d0] sm:$0xff] }
 0x62b   : > { %2127 = vmatprep.subr.bf16.mxu1 %v1920_v60  ;;  %v1942_v60 = vld [vmem:[#allocation3 + $0x2e8] sm:$0xff] }
 0x62e   : > { %2128 = vmatpush1.bf16.msra.mxu1 %v1919_v38  ;;  %v1941_v38 = vld [vmem:[#allocation3 + $0x2e0] sm:$0xff] }
 0x62f   : > { %2129 = vmatprep.subr.bf16.mxu1 %v1922_v44  ;;  %v1944_v44 = vld [vmem:[#allocation3 + $0x2f8] sm:$0xff] }
 0x632   : > { %2130 = vmatpush1.bf16.msra.mxu1 %v1921_v55  ;;  %v1943_v55 = vld [vmem:[#allocation3 + $0x2f0] sm:$0xff] }
 0x633   : > { %2131 = vmatprep.subr.bf16.mxu1 %v1924_v57  ;;  %v2025_v57 = vpack.c.bf16 %v4053_v39, %v4053_v39 }
 0x636   : > { %2132 = vmatpush1.bf16.msra.mxu1 %v1923_v36  ;;  %v2027_v36 = vld [vmem:[%s4210_s7] sm:$0x3] }
 0x637   : > { %2133 = vmatprep.subr.bf16.mxu1 %v1926_v35  ;;  %v2032_v35 = vrot.slane %v2027_v36, %v4003_v49 }
 0x63a   : > { %2134 = vmatpush1.bf16.msra.mxu1 %v1925_v43  ;;  %v2036_v43 = vrot.slane %v2027_v36, %v4008_v52 }
 0x63b   : > { %2135 = vmatprep.subr.bf16.mxu1 %v1928_v45 }
 0x63e   : > { %2136 = vmatpush1.bf16.msra.mxu1 %v1927_v46 }
 0x63f   : > { %2137 = vmatprep.subr.bf16.mxu1 %v1930_v48 }
 0x642   : > { %2138 = vmatpush1.bf16.msra.mxu1 %v1929_v59 }
 0x643   : > { %2139 = vmatprep.subr.bf16.mxu1 %v1932_v58 }
 0x646   : > { %2140 = vmatpush1.bf16.msra.mxu1 %v1931_v50 }
 0x647   : > { %2141 = vmatprep.subr.bf16.mxu1 %v1934_v62 }
 0x64a   : > { %2142 = vmatpush1.bf16.msra.mxu1 %v1933_v37 }
 0x64b   : > { %2143 = vmatprep.subr.bf16.mxu1 %v1936_v63 }
 0x64e   : > { %2144 = vmatpush1.bf16.msra.mxu1 %v1935_v51 }
 0x64f   : > { %2145 = vmatprep.subr.bf16.mxu1 %v1938_v53 }
 0x652   : > { %2146 = vmatpush1.bf16.msra.mxu1 %v1937_v61 }
 0x653   : > { %2147 = vmatprep.subr.bf16.mxu1 %v1940_v54 }
 0x656   : > { %2148 = vmatpush1.bf16.msra.mxu1 %v1939_v56 }
 0x657   : > { %2149 = vmatprep.subr.bf16.mxu1 %v1942_v60 }
 0x65a   : > { %2150 = vmatpush1.bf16.msra.mxu1 %v1941_v38 }
 0x65b   : > { %2151 = vmatprep.subr.bf16.mxu1 %v1944_v44 }
 0x65e   : > { %2152 = vmatpush1.bf16.msra.mxu1 %v1943_v55 }
 0x661   : > { %2154 = vmatmul.mubr.bf16.vlgmr.msra.gmra.mrb[12].mxu1 %v2025_v57 }
 0x734   : > { %v2155_v45 = vpop.f32.mrb[12].mxu1 }
 0x735   : > { %v3166_v46 = vadd.f32 %v2155_v45, %v2032_v35  ;;  %v2157_v48 = vpop.f32.mrb[13].mxu1 }
 0x736   : > { %v3167_v59 = vadd.f32 %v2157_v48, %v2036_v43  ;;  %v2159_v58 = vpop.f32.mrb[14].mxu1 }
 0x737   : > { %v2162_v50 = vmul.f32 0.5, %v3166_v46  ;;  %v2160_v62 = vpop.f32.mrb[15].mxu1 }
 0x738   : > { %v2163_v37 = vmul.f32 0.5, %v3167_v59 }
 0x739   : > { %3382 = vtanh.f32 %v2162_v50 }
 0x73a   : > { %3384 = vtanh.f32 %v2163_v37 }
 0x743   : > { %v3383_v39 = vpop.eup %3382 }
 0x744   : > { %v3385_v63 = vpop.eup %3384  ;;  %v2166_v51 = vmul.f32 0.5, %v3383_v39 }
 0x745   : > { %v2167_v53 = vmul.f32 0.5, %v3385_v63 }
 0x746   : > { %v2168_v61 = vadd.f32 0.5, %v2166_v51 }
 0x747   : > { %v2169_v54 = vadd.f32 0.5, %v2167_v53 }
 0x748   : > { %v2170_v56 = vmul.f32 %v3166_v46, %v2168_v61 }
 0x749   : > { %v2171_v49 = vmul.f32 %v3167_v59, %v2169_v54 }
 0x74a   : > { %v2172_v60 = vpack.c.bf16 %v2170_v56, %v2170_v56 }
 0x74b   : > { %v2173_v52 = vpack.c.bf16 %v2171_v49, %v2171_v49 }
 0x74c   : > { %3485 = dma.done.wait [#allocation5 + $0x2], 6144 }
 0x74d   : > { %3486 = vsyncadd [#allocation5 + $0x2], 4294961152  ;;  %2981 = vmatprep.subr.msk.bf16.mxu0 %vm1963_vm4, %v2173_v52  ;;  %v2243_v38 = vsel %vm1963_vm4, %v2172_v60, 0  ;;  %2280 = vmatprep.mubr.bf16.mxu0 %v4263_v47  ;;  %v4264_v44 = vmov 0.0   ;;  %v3386_v55 = vld [vmem:[%s4211_s8] sm:$0xff]   ;;  %v3391_v53 = vld [vmem:[%s4214_s11 + $0x48] sm:$0xff]  }
 0x74e   : > { %2249 = vmatpush1.bf16.msra.mxu0 %v2243_v38  ;;  %3148 = vmatprep.subr.bf16.mxu1 %v4264_v44  ;;  %v3387_v57 = vld [vmem:[%s4211_s8 + $0x8] ss:$0 sps:$4 sm:$0xff]   ;;  %v3389_v37 = vld [vmem:[%s4214_s11 + $0x40] sm:$0xff]   ;;  %v3393_v54 = vld [vmem:[%s4214_s11 + $0x50] sm:$0xff]   ;;  %s4275_s18 = sld [smem:[#allocation34_spill]]  ;;  %vm2714_vm6 = vcmask 523264  }
 0x74f   : > { %3023 = vmatprep.subr.bf16.mxu0 %v3753_v8  ;;  %3156 = vmatprep.mubr.msk.bf16.mxu1 %vm3509_vm1, %v4264_v44  ;;  %v3388_v63 = vld [vmem:[%s4213_s10] sm:$0xff]   ;;  %v3392_v61 = vld [vmem:[%s4214_s11 + $0x8] sm:$0xff]   ;;  %v3394_v56 = vld [vmem:[%s4214_s11 + $0x10] sm:$0xff]   ;;  %s4276_s25 = sld [smem:[#allocation36_spill]] }
 0x750   : > { %v3390_v51 = vld [vmem:[%s4214_s11] sm:$0xff]   ;;  %v3395_v49 = vld [vmem:[%s4214_s11 + $0x58] sm:$0xff]  }
 0x751   : > { %2982 = vmatmul.mubr.msk.bf16.vlgmr.msra.gmra.mrb[32].mxu0 %vm1956_vm5, %v3386_v55  ;;  %v3396_v60 = vld [vmem:[%s4214_s11 + $0x18] sm:$0xff]   ;;  %v3397_v52 = vld [vmem:[%s4214_s11 + $0x60] sm:$0xff]   ;;  %v3399_v55 = vld [vmem:[%s4214_s11 + $0x68] sm:$0xff]  }
 0x752   : > { %2290 = vmatprep.mubr.bf16.mxu0 %v4263_v47  ;;  %3024 = vmatpush3.bf16.msra.mxu0 %v3713_v0  ;;  %v3398_v38 = vld [vmem:[%s4214_s11 + $0x20] sm:$0xff]  }
 0x753   : > { %3025 = vmatprep.subr.bf16.mxu0 %v3758_v9 }
 0x756   : > { %3026 = vmatpush3.bf16.msra.mxu0 %v3718_v1 }
 0x757   : > { %3027 = vmatprep.subr.bf16.mxu0 %v3763_v10 }
 0x759   : > { %2983 = vmatmul.mubr.msk.bf16.gmra.mrb[36].mxu0 %vm1956_vm5, %v3387_v57  ;;  %v3400_v57 = vld [vmem:[%s4214_s11 + $0x28] sm:$0xff]  }
 0x75a   : > { %3028 = vmatpush3.bf16.msra.mxu0 %v3723_v2 }
 0x75b   : > { %3029 = vmatprep.subr.bf16.mxu0 %v3768_v11 }
 0x75e   : > { %3030 = vmatpush3.bf16.msra.mxu0 %v3728_v3 }
 0x75f   : > { %3031 = vmatprep.subr.bf16.mxu0 %v3773_v12 }
 0x762   : > { %3032 = vmatpush3.bf16.msra.mxu0 %v3733_v4 }
 0x763   : > { %3033 = vmatprep.subr.bf16.mxu0 %v3778_v13  ;;  %v4265_v13 = vld [vmem:[#allocation26_spill] sm:$0xff] }
 0x766   : > { %3034 = vmatpush3.bf16.msra.mxu0 %v3738_v5 }
 0x767   : > { %3035 = vmatprep.subr.bf16.mxu0 %v3783_v14  ;;  %v4266_v14 = vld [vmem:[#allocation21_spill] sm:$0xff] }
 0x76a   : > { %3036 = vmatpush3.bf16.msra.mxu0 %v3743_v6 }
 0x76b   : > { %3037 = vmatprep.subr.bf16.mxu0 %v3788_v15  ;;  %v4267_v15 = vld [vmem:[#allocation27_spill] sm:$0xff] }
 0x76e   : > { %3038 = vmatpush3.bf16.msra.mxu0 %v3748_v7 }
 0x76f   : > { %3045 = vmatprep.subr.bf16.mxu0 %v3833_v24 }
 0x824   : > { %v2282_v0 = vpop.f32.mrb[32].mxu0 }
 0x825   : > { %v2284_v1 = vpop.f32.mrb[33].mxu0  ;;  %v2299_v8 = vpack.c.bf16 %v2282_v0, %v2282_v0  ;;  %v3401_v0 = vld [vmem:[%s4214_s11 + $0x70] sm:$0xff]  }
 0x826   : > { %v2300_v2 = vpack.c.bf16 %v2284_v1, %v2284_v1  ;;  %v2286_v3 = vpop.f32.mrb[34].mxu0  ;;  %v3402_v1 = vld [vmem:[%s4214_s11 + $0x30] sm:$0xff]  }
 0x827   : > { %v2288_v4 = vpop.f32.mrb[35].mxu0  ;;  %v2301_v12 = vpack.c.bf16 %v2286_v3, %v2286_v3  ;;  %v3404_v3 = vld [vmem:[%s4214_s11 + $0x38] sm:$0xff]  }
 0x828   : > { %v2302_v9 = vpack.c.bf16 %v2288_v4, %v2288_v4  ;;  %2344 = vmatprep.mubr.bf16.mxu0 %v2300_v2  ;;  %v3403_v2 = vld [vmem:[%s4214_s11 + $0x78] sm:$0xff]  }
 0x829   : > { %2345 = vmatmul.mubr.bf16.vlgmr.msra.gmra.mrb[40].mxu0 %v2299_v8 }
 0x82a   : > { %3046 = vmatpush3.bf16.msra.mxu0 %v3793_v16  ;;  %2384 = vmatprep.mubr.bf16.mxu0 %v2302_v9  ;;  %v4268_v16 = vld [vmem:[#allocation22_spill] sm:$0xff] }
 0x82b   : > { %3047 = vmatprep.subr.bf16.mxu0 %v3838_v25 }
 0x82c   : > { %v2292_v5 = vpop.f32.mrb[36].mxu0 }
 0x82d   : > { %v2294_v6 = vpop.f32.mrb[37].mxu0 }
 0x82e   : > { %3048 = vmatpush3.bf16.msra.mxu0 %v3798_v17  ;;  %v2296_v7 = vpop.f32.mrb[38].mxu0  ;;  %v2304_v11 = vpack.c.bf16 %v2294_v6, %v2294_v6  ;;  %v4269_v17 = vld [vmem:[#allocation28_spill] sm:$0xff] }
 0x82f   : > { %3049 = vmatprep.subr.bf16.mxu0 %v3843_v26  ;;  %v2297_v10 = vpop.f32.mrb[39].mxu0 }
 0x830   : > { %v3405_v10 = vld [vmem:[#allocation8] sm:$0xff]  }
 0x831   : > { %3149 = vmatpush3.bf16.msra.mxu1 %v3405_v10 }
 0x832   : > { %3050 = vmatpush3.bf16.msra.mxu0 %v3803_v18  ;;  %v4270_v18 = vld [vmem:[#allocation23_spill] sm:$0xff]  ;;  %3150 = vmatprep.subr.bf16.mxu1 %v4264_v44 }
 0x833   : > { %3051 = vmatprep.subr.bf16.mxu0 %v3848_v27 }
 0x836   : > { %3052 = vmatpush3.bf16.msra.mxu0 %v3808_v19  ;;  %v4271_v19 = vld [vmem:[#allocation29_spill] sm:$0xff] }
 0x837   : > { %3053 = vmatprep.subr.bf16.mxu0 %v3853_v28 }
 0x83a   : > { %3054 = vmatpush3.bf16.msra.mxu0 %v3813_v20  ;;  %v4272_v20 = vld [vmem:[#allocation24_spill] sm:$0xff] }
 0x83b   : > { %3055 = vmatprep.subr.bf16.mxu0 %v3858_v29  ;;  %v2984_v29 = vld [vmem:[%s4212_s9] ss:$0 sm:$0xff] }
 0x83e   : > { %3056 = vmatpush3.bf16.msra.mxu0 %v3818_v21  ;;  %v4273_v21 = vld [vmem:[#allocation30_spill] sm:$0xff] }
 0x83f   : > { %3057 = vmatprep.subr.bf16.mxu0 %v3863_v30 }
 0x842   : > { %3058 = vmatpush3.bf16.msra.mxu0 %v3823_v22  ;;  %v4274_v22 = vld [vmem:[#allocation25_spill] sm:$0xff] }
 0x843   : > { %3059 = vmatprep.subr.bf16.mxu0 %v3868_v31 }
 0x846   : > { %3060 = vmatpush3.bf16.msra.mxu0 %v3828_v23  ;;  %v2303_v23 = vpack.c.bf16 %v2292_v5, %v2292_v5 }
 0x847   : > { %3067 = vmatprep.subr.bf16.mxu0 %v3913_v40 }
 0x849   : > { %2385 = vmatmul.mubr.bf16.vlgmr.msra.gmra.mrb[44].mxu0 %v2301_v12  ;;  %v3407_v12 = vld [vmem:[#allocation8 + $0x10] sm:$0xff]  }
 0x84a   : > { %3068 = vmatpush3.bf16.msra.mxu0 %v3873_v32  ;;  %2424 = vmatprep.mubr.bf16.mxu0 %v2304_v11  ;;  %v3406_v11 = vld [vmem:[#allocation8 + $0x8] sm:$0xff]  }
 0x84b   : > { %3069 = vmatprep.subr.bf16.mxu0 %v3918_v41  ;;  %3151 = vmatpush3.bf16.msra.mxu1 %v3406_v11 }
 0x84c   : > { %3152 = vmatprep.subr.bf16.mxu1 %v4264_v44 }
 0x84e   : > { %3070 = vmatpush3.bf16.msra.mxu0 %v3878_v33 }
 0x84f   : > { %3071 = vmatprep.subr.bf16.mxu0 %v3923_v42  ;;  %3153 = vmatpush3.bf16.msra.mxu1 %v3407_v12 }
 0x850   : > { %3154 = vmatprep.subr.bf16.mxu1 %v4264_v44 }
 0x852   : > { %3072 = vmatpush3.bf16.msra.mxu0 %v3883_v34 }
 0x853   : > { %3073 = vmatprep.subr.bf16.mxu0 %v4265_v13  ;;  %v3408_v13 = vld [vmem:[#allocation8 + $0x18] sm:$0xff]  }
 0x854   : > { %3155 = vmatpush3.bf16.msra.mxu1 %v3408_v13 }
 0x856   : > { %3074 = vmatpush3.bf16.msra.mxu0 %v4266_v14 }
 0x857   : > { %3075 = vmatprep.subr.bf16.mxu0 %v4267_v15  ;;  %v2987_v15 = vld [vmem:[%s4275_s18] ss:$0 sm:$0xff] }
 0x85a   : > { %3076 = vmatpush3.bf16.msra.mxu0 %v4268_v16 }
 0x85b   : > { %3077 = vmatprep.subr.bf16.mxu0 %v4269_v17 }
 0x85e   : > { %3078 = vmatpush3.bf16.msra.mxu0 %v4270_v18 }
 0x85f   : > { %3079 = vmatprep.subr.bf16.mxu0 %v4271_v19 }
 0x862   : > { %3080 = vmatpush3.bf16.msra.mxu0 %v4272_v20 }
 0x863   : > { %3081 = vmatprep.subr.bf16.mxu0 %v4273_v21 }
 0x866   : > { %3082 = vmatpush3.bf16.msra.mxu0 %v4274_v22 }
 0x867   : > { %3142 = vmatprep.subr.bf16.mxu0 %v4264_v44 }
 0x869   : > { %2425 = vmatmul.mubr.bf16.vlgmr.msra.gmra.mrb[48].mxu0 %v2303_v23 }
 0x86a   : > { %3144 = vmatprep.mubr.msk.bf16.mxu0 %vm3509_vm1, %v4264_v44 }
 0x8fc   : > { %v3039_v24 = vpop.f32.mrb[40].mxu0 }
 0x8fd   : > { %v3040_v25 = vpop.f32.mrb[41].mxu0 }
 0x8fe   : > { %v3041_v26 = vadd.f32 %v3040_v25, %v3039_v24  ;;  %v3042_v27 = vpop.f32.mrb[42].mxu0 }
 0x8ff   : > { %v3043_v28 = vpop.f32.mrb[43].mxu0 }
 0x900   : > { %v2347_v32 = vadd.f32 %v3041_v26, %v2984_v29  ;;  %v3004_v26 = vld [vmem:[%s4276_s25] ss:$0 sm:$0xff] }
 0x91c   : > { %v3061_v30 = vpop.f32.mrb[44].mxu0 }
 0x91d   : > { %v3062_v31 = vpop.f32.mrb[45].mxu0 }
 0x91e   : > { %v3063_v33 = vadd.f32 %v3062_v31, %v3061_v30  ;;  %v3064_v34 = vpop.f32.mrb[46].mxu0 }
 0x91f   : > { %v3065_v40 = vpop.f32.mrb[47].mxu0 }
 0x920   : > { %v2387_v41 = vadd.f32 %v3063_v33, %v2347_v32 }
 0x93c   : > { %v3083_v42 = vpop.f32.mrb[48].mxu0 }
 0x93d   : > { %v3084_v47 = vpop.f32.mrb[49].mxu0 }
 0x93e   : > { %v3085_v36 = vadd.f32 %v3084_v47, %v3083_v42  ;;  %v3086_v35 = vpop.f32.mrb[50].mxu0 }
 0x93f   : > { %v3087_v43 = vpop.f32.mrb[51].mxu0 }
 0x940   : > { %v2427_v45 = vadd.f32 %v3085_v36, %v2387_v41 }
 0x942   : > { %v2432_v46 = vmul.f32 0.5, %v2427_v45 }
 0x944   : > { %3409 = vtanh.f32 %v2432_v46 }
 0x94e   : > { %v3410_v48 = vpop.eup %3409 }
 0x94f   : > { %v2434_v59 = vmul.f32 0.5, %v3410_v48 }
 0x951   : > { %v2435_v58 = vadd.f32 0.5, %v2434_v59 }
 0x953   : > { %v2436_v50 = vmul.f32 %v2435_v58, %v2427_v45 }
 0x955   : > { %v2437_v62 = vpack.c.bf16 %v2436_v50, %v2436_v50 }
 0x957   : > { %v2481_v39 = vsel %vm1963_vm4, %v2437_v62, 0 }
 0x958   : > { %3143 = vmatpush3.bf16.msra.mxu0 %v2481_v39 }
 0x959   : > { %3091 = vmatprep.subr.bf16.mxu0 %v3389_v37 }
 0x95b   : > { %3145 = vmatmul.mubr.msk.bf16.vlgmr.msra.gmra.mrb[52].mxu0 %vm1956_vm5, %v3388_v63 }
 0x95c   : > { %3092 = vmatpush3.bf16.msra.mxu0 %v3390_v51 }
 0x95d   : > { %3093 = vmatprep.subr.bf16.mxu0 %v3391_v53 }
 0x960   : > { %3094 = vmatpush3.bf16.msra.mxu0 %v3392_v61 }
 0x961   : > { %3095 = vmatprep.subr.bf16.mxu0 %v3393_v54 }
 0x964   : > { %3096 = vmatpush3.bf16.msra.mxu0 %v3394_v56 }
 0x965   : > { %3097 = vmatprep.subr.bf16.mxu0 %v3395_v49 }
 0x968   : > { %3098 = vmatpush3.bf16.msra.mxu0 %v3396_v60 }
 0x969   : > { %3099 = vmatprep.subr.bf16.mxu0 %v3397_v52 }
 0x96c   : > { %3100 = vmatpush3.bf16.msra.mxu0 %v3398_v38 }
 0x96d   : > { %3101 = vmatprep.subr.bf16.mxu0 %v3399_v55 }
 0x970   : > { %3102 = vmatpush3.bf16.msra.mxu0 %v3400_v57 }
 0x971   : > { %3103 = vmatprep.subr.bf16.mxu0 %v3401_v0 }
 0x974   : > { %3104 = vmatpush3.bf16.msra.mxu0 %v3402_v1 }
 0x975   : > { %3105 = vmatprep.subr.bf16.mxu0 %v3403_v2 }
 0x978   : > { %3106 = vmatpush3.bf16.msra.mxu0 %v3404_v3 }
 0xa2e   : > { %v2517_v8 = vpop.f32.mrb[52].mxu0 }
 0xa2f   : > { %v3146_v4 = vpop.f32.mrb[53].mxu0  ;;  %v2524_v7 = vpack.c.bf16 %v2517_v8, %v2517_v8 }
 0xa30   : > { %v2520_v9 = vpop.f32.mrb[54].mxu0 }
 0xa31   : > { %v2525_v5 = vpack.c.bf16 %v2520_v9, %v2520_v9  ;;  %v3147_v6 = vpop.f32.mrb[55].mxu0 }
 0xa33   : > { %2661 = vmatprep.mubr.bf16.mxu0 %v2525_v5 }
 0xa34   : > { %2662 = vmatmul.mubr.bf16.vlgmr.msra.gmra.mrb[56].mxu0 %v2524_v7 }
 0xb07   : > { %v3107_v14 = vpop.f32.mrb[56].mxu0 }
 0xb08   : > { %v3108_v16 = vpop.f32.mrb[57].mxu0 }
 0xb09   : > { %v3109_v17 = vadd.f32 %v3108_v16, %v3107_v14  ;;  %v3110_v18 = vpop.f32.mrb[58].mxu0 }
 0xb0a   : > { %v3111_v19 = vpop.f32.mrb[59].mxu0 }
 0xb0b   : > { %v2664_v20 = vadd.f32 %v3109_v17, %v2987_v15 }
 0xb0d   : > { %v2669_v21 = vmul.f32 0.5, %v2664_v20 }
 0xb0f   : > { %3411 = vtanh.f32 %v2669_v21 }
 0xb19   : > { %v3412_v22 = vpop.eup %3411 }
 0xb1a   : > { %v2671_v23 = vmul.f32 0.5, %v3412_v22 }
 0xb1c   : > { %v2672_v24 = vadd.f32 0.5, %v2671_v23 }
 0xb1e   : > { %v2673_v25 = vmul.f32 %v2672_v24, %v2664_v20 }
 0xb20   : > { %v2674_v44 = vpack.c.bf16 %v2673_v25, %v2673_v25 }
 0xb22   : > { %3157 = vmatmul.mubr.msk.bf16.vlgmr.msra.gmra.mrb[16].mxu1 %vm2714_vm6, %v2674_v44 }
 0xbf5   : > { %v2752_v27 = vpop.f32.mrb[16].mxu1 }
 0xbf6   : > { %v2753_v28 = vadd.f32 %v3004_v26, %v2752_v27  ;;  %v3158_v29 = vpop.f32.mrb[17].mxu1 }
 0xbf7   : > { %v2755_v30 = vpop.f32.mrb[18].mxu1 }
 0xbf8   : > { %2758 = vst [vmem:[%s3698_s12] sm:$0xff] %v2753_v28  ;;  %v3159_v31 = vpop.f32.mrb[19].mxu1 }
 0xbf9 PF: > { %s4277_s28 = sld [smem:[#allocation20_spill]] }
 0xbff   : > { %s30_s27 = sadd.s32 1, %s4277_s28  }
 0xc00   : > { %p27_p5 = scmp.ge.s32.totalorder %s30_s27, 4  }
 0xc02   :  { %29 = sbr.rel (!%p27_p5) target bundleno = 10 (0xa), region = 181 }
 0xc09   :  { %2778 = vsyncpa [#allocation7], 1 }
 0xc0a   :  { %2780 = vsyncpa [#allocation7 + $0x1], 1 }
 0xc0b   :  { %2781 = vsyncpa [#allocation9], 1 }
 0xc0c   :  { %2782 = vsyncmov [#allocation5] }
 0xc0f   :  { %s2783_s19 = vpop.sfrf %2782 }
 0xc10   :  { %p3012_p10 = scmp.ne.s32.totalorder %s2783_s19, 0 }
 0xc12   :  { %2787 = shalt.err (%p3012_p10)  }
 0xc13   :  { %2789 = vsyncmov [#allocation5 + $0x1] }
 0xc16   :  { %s2790_s29 = vpop.sfrf %2789 }
 0xc17   :  { %p3013_p11 = scmp.ne.s32.totalorder %s2790_s29, 0 }
 0xc19   :  { %2794 = shalt.err (%p3013_p11)  }
 0xc1a   :  { %2796 = vsyncmov [#allocation5 + $0x2] }
 0xc1d   :  { %s2797_s12 = vpop.sfrf %2796 }
 0xc1e   :  { %p3014_p12 = scmp.ne.s32.totalorder %s2797_s12, 0 }
 0xc20   :  { %2801 = shalt.err (%p3014_p12)  }

</bundles_post_ra>
